<compile_context>
chip_gen: v5e
topology: v5e:2x2
jax: 0.10.0
libtpu: 0.0.40
codegen_flags: <defaults>
</compile_context>

<pallas_src>
import jax
import jax.numpy as jnp
import numpy as np
from jax import lax
from jax.experimental import pallas as pl
from jax.experimental.pallas import tpu as pltpu

EPS = 1e-6  # matches torch.nn.functional.pairwise_distance default eps


def _make_matching_kernel(n_pairs, n_pairs_pad):
    """Builds the kernel for a fixed (static) number of anchor pairs."""
    inv_p = np.float32(1.0 / n_pairs)  # hoisted reciprocal (no divide in epilogue)

    def kernel(idx1_ref, idx2_ref,      # SMEM (P_pad,) int32, scalar-prefetched
               emb1_hbm, emb2_hbm,      # HBM (N, D) f32 refs (memory_space=pl.ANY)
               wt_ref, b_ref,           # VMEM (D, D) f32, (1, D) f32
               out_ref,                 # VMEM (1, 1) f32
               x1_buf, x2_buf,          # VMEM (P_pad, D) f32 scratch
               sems):                   # DMA semaphores (2, P_pad)
        # ---- gather only the P anchor rows from HBM (statically unrolled row DMAs)
        copies = []
        for i in range(n_pairs_pad):
            c1 = pltpu.make_async_copy(
                emb1_hbm.at[pl.ds(idx1_ref[i], 1), :],
                x1_buf.at[pl.ds(i, 1), :],
                sems.at[0, i])
            c2 = pltpu.make_async_copy(
                emb2_hbm.at[pl.ds(idx2_ref[i], 1), :],
                x2_buf.at[pl.ds(i, 1), :],
                sems.at[1, i])
            c1.start()
            c2.start()
            copies.append((c1, c2))
        for c1, c2 in copies:
            c1.wait()
            c2.wait()

        # ---- fc1 on the gathered rows only: (P_pad, D) @ (D, D) + bias (MXU, f32 acc)
        x2_after = (
            jnp.dot(x2_buf[...], wt_ref[...], preferred_element_type=jnp.float32)
            + b_ref[...]
        )

        # ---- vectorized pairwise distance over all pairs in one pass
        diff = x1_buf[...] - x2_after + EPS                  # (P_pad, D)   VPU
        sq = jnp.sum(diff * diff, axis=-1, keepdims=True)    # (P_pad, 1)   XLU
        dist = jnp.sqrt(sq)                                  # (P_pad, 1)   EUP

        if n_pairs_pad != n_pairs:
            row_ids = lax.broadcasted_iota(jnp.int32, dist.shape, 0)
            dist = jnp.where(row_ids < n_pairs, dist, 0.0)   # mask padded rows

        out_ref[...] = jnp.sum(dist, axis=0, keepdims=True) * inv_p

    return kernel


def matching_forward(embedding_1, embedding_2, anchors, w1, b1):
    """embedding_1/2: (N, D) f32; anchors: (P, 2) int; w1: (D, D); b1: (D,)."""
    embedding_1 = jnp.asarray(embedding_1, jnp.float32)
    embedding_2 = jnp.asarray(embedding_2, jnp.float32)
    N, D = embedding_1.shape
    P = int(anchors.shape[0])
    P_pad = max(8, ((P + 7) // 8) * 8)          # pad pair dim to full sublanes

    anchors = jnp.asarray(anchors, jnp.int32)
    # flat 1-D SMEM-friendly index arrays; padded slots point at row 0 (masked later)
    idx1 = jnp.zeros((P_pad,), jnp.int32).at[:P].set(anchors[:, 0])
    idx2 = jnp.zeros((P_pad,), jnp.int32).at[:P].set(anchors[:, 1])

    wt = jnp.asarray(w1, jnp.float32).T          # nn.Linear computes x @ W.T + b
    b2d = jnp.asarray(b1, jnp.float32).reshape(1, D)

    kernel = _make_matching_kernel(P, P_pad)

    # TODO(synk): for lane-dense vregs/MXU, D could additionally be zero-padded to a
    # multiple of 128 (with a lane mask on the distance); skipped here since D is a
    # model hyper-parameter and padding the HBM-resident embeddings costs O(N*D).
    out = pl.pallas_call(
        kernel,
        out_shape=jax.ShapeDtypeStruct((1, 1), jnp.float32),
        grid_spec=pltpu.PrefetchScalarGridSpec(
            num_scalar_prefetch=2,
            grid=(1,),
            in_specs=[
                pl.BlockSpec(memory_space=pl.ANY),              # embedding_1 (HBM)
                pl.BlockSpec(memory_space=pl.ANY),              # embedding_2 (HBM)
                pl.BlockSpec((D, D), lambda i, i1, i2: (0, 0)),  # fc1 weight^T
                pl.BlockSpec((1, D), lambda i, i1, i2: (0, 0)),  # fc1 bias
            ],
            out_specs=pl.BlockSpec((1, 1), lambda i, i1, i2: (0, 0)),
            scratch_shapes=[
                pltpu.VMEM((P_pad, D), jnp.float32),   # gathered x1 rows
                pltpu.VMEM((P_pad, D), jnp.float32),   # gathered x2 rows
                pltpu.SemaphoreType.DMA((2, P_pad)),
            ],
        ),
        compiler_params=pltpu.CompilerParams(
            dimension_semantics=("arbitrary",)),
    )(idx1, idx2, embedding_1, embedding_2, wt, b2d)
    return out[0, 0]


def matching_reference(embedding_1, embedding_2, anchors, w1, b1):
    emb2_after = embedding_2 @ w1.T + b1
    x1 = embedding_1[anchors[:, 0]]
    x2 = emb2_after[anchors[:, 1]]
    d = jnp.sqrt(jnp.sum((x1 - x2 + EPS) ** 2, axis=-1))
    return jnp.mean(d)


if __name__ == "__main__":
    N = 16   # number of nodes in each network
    D = 32   # d_embedding_before
    P = 5    # number of observed anchor pairs (non-multiple of 8 to test masking)

    key = jax.random.PRNGKey(0)
    k_e1, k_e2, k_w1, k_b1, k_w2, k_b2, k_a = jax.random.split(key, 7)

    embedding_1 = jax.random.normal(k_e1, (N, D), dtype=jnp.float32)
    embedding_2 = jax.random.normal(k_e2, (N, D), dtype=jnp.float32)

    # fc1 parameters (Linear(D, D): weight (out, in), bias (out,))
    bound = 1.0 / np.sqrt(D)
    w1 = jax.random.uniform(k_w1, (D, D), minval=-bound, maxval=bound, dtype=jnp.float32)
    b1 = jax.random.uniform(k_b1, (D,), minval=-bound, maxval=bound, dtype=jnp.float32)
    # fc2 parameters exist in __init__ but are never used in forward(); omitted.

    anchors = jax.random.randint(k_a, (P, 2), 0, N, dtype=jnp.int32)

    dis_p = matching_forward(embedding_1, embedding_2, anchors, w1, b1)
    dis_p = jax.block_until_ready(dis_p)

    ref = matching_reference(embedding_1, embedding_2, anchors, w1, b1)
    assert np.allclose(np.asarray(dis_p), np.asarray(ref), rtol=1e-5, atol=1e-5), (
        dis_p, ref)

    print("KERNEL_OK")
</pallas_src>

<mosaic_0001>
module attributes {stable_mosaic.version = 11 : i64} {
  func.func @kernel(%arg0: i32, %arg1: memref<8xi32, #tpu.memory_space<smem>>, %arg2: memref<8xi32, #tpu.memory_space<smem>>, %arg3: memref<16x32xf32, #tpu.memory_space<any>>, %arg4: memref<16x32xf32, #tpu.memory_space<any>>, %arg5: memref<32x32xf32, #tpu.memory_space<vmem>>, %arg6: memref<1x32xf32, #tpu.memory_space<vmem>>, %arg7: memref<1x1xf32, #tpu.memory_space<vmem>>, %arg8: memref<8x32xf32, #tpu.memory_space<vmem>>, %arg9: memref<8x32xf32, #tpu.memory_space<vmem>>, %arg10: memref<2x8x!tpu.dma_semaphore, #tpu.memory_space<semaphore_mem>>) attributes {dimension_semantics = [#tpu.dimension_semantics<arbitrary>], iteration_bounds = array<i64: 1>, scalar_prefetch = 2 : i64, scratch_operands = 3 : i64, tpu.core_type = #tpu.core_type<tc>, window_params = [{}, {}, {pipeline_mode = #tpu.pipeline_mode<synchronous>, transform_indices = @transform_2, window_bounds = array<i64: 32, 32>}, {pipeline_mode = #tpu.pipeline_mode<synchronous>, transform_indices = @transform_3, window_bounds = array<i64: 1, 32>}, {pipeline_mode = #tpu.pipeline_mode<synchronous>, transform_indices = @transform_4, window_bounds = array<i64: 1, 1>}]} {
    %c0 = arith.constant 0 : index
    %0 = memref.load %arg1[%c0] : memref<8xi32, #tpu.memory_space<smem>>
    %c0_0 = arith.constant 0 : index
    %1 = memref.load %arg2[%c0_0] : memref<8xi32, #tpu.memory_space<smem>>
    %c0_i32 = arith.constant 0 : i32
    %c0_i32_1 = arith.constant 0 : i32
    %c0_i32_2 = arith.constant 0 : i32
    %2 = tpu.memref_slice %arg3[%0, %c0_i32_2] : memref<16x32xf32, #tpu.memory_space<any>> -> memref<1x32xf32, #tpu.memory_space<any>>
    %c0_i32_3 = arith.constant 0 : i32
    %c0_i32_4 = arith.constant 0 : i32
    %3 = tpu.memref_slice %arg8[%c0_i32_3, %c0_i32_4] : memref<8x32xf32, #tpu.memory_space<vmem>> -> memref<1x32xf32, #tpu.memory_space<vmem>>
    %4 = tpu.memref_slice %arg10[%c0_i32, %c0_i32_1] : memref<2x8x!tpu.dma_semaphore, #tpu.memory_space<semaphore_mem>> -> memref<1x1x!tpu.dma_semaphore, #tpu.memory_space<semaphore_mem>>
    %5 = tpu.memref_squeeze %4 : memref<1x1x!tpu.dma_semaphore, #tpu.memory_space<semaphore_mem>> -> memref<!tpu.dma_semaphore, #tpu.memory_space<semaphore_mem>>
    tpu.enqueue_dma source(%2 : memref<1x32xf32, #tpu.memory_space<any>>) target(%3 : memref<1x32xf32, #tpu.memory_space<vmem>>) target_semaphore(%5 : memref<!tpu.dma_semaphore, #tpu.memory_space<semaphore_mem>>)
    %c1_i32 = arith.constant 1 : i32
    %c0_i32_5 = arith.constant 0 : i32
    %c0_i32_6 = arith.constant 0 : i32
    %6 = tpu.memref_slice %arg4[%1, %c0_i32_6] : memref<16x32xf32, #tpu.memory_space<any>> -> memref<1x32xf32, #tpu.memory_space<any>>
    %c0_i32_7 = arith.constant 0 : i32
    %c0_i32_8 = arith.constant 0 : i32
    %7 = tpu.memref_slice %arg9[%c0_i32_7, %c0_i32_8] : memref<8x32xf32, #tpu.memory_space<vmem>> -> memref<1x32xf32, #tpu.memory_space<vmem>>
    %8 = tpu.memref_slice %arg10[%c1_i32, %c0_i32_5] : memref<2x8x!tpu.dma_semaphore, #tpu.memory_space<semaphore_mem>> -> memref<1x1x!tpu.dma_semaphore, #tpu.memory_space<semaphore_mem>>
    %9 = tpu.memref_squeeze %8 : memref<1x1x!tpu.dma_semaphore, #tpu.memory_space<semaphore_mem>> -> memref<!tpu.dma_semaphore, #tpu.memory_space<semaphore_mem>>
    tpu.enqueue_dma source(%6 : memref<1x32xf32, #tpu.memory_space<any>>) target(%7 : memref<1x32xf32, #tpu.memory_space<vmem>>) target_semaphore(%9 : memref<!tpu.dma_semaphore, #tpu.memory_space<semaphore_mem>>)
    %c1 = arith.constant 1 : index
    %10 = memref.load %arg1[%c1] : memref<8xi32, #tpu.memory_space<smem>>
    %c1_9 = arith.constant 1 : index
    %11 = memref.load %arg2[%c1_9] : memref<8xi32, #tpu.memory_space<smem>>
    %c0_i32_10 = arith.constant 0 : i32
    %c1_i32_11 = arith.constant 1 : i32
    %c0_i32_12 = arith.constant 0 : i32
    %12 = tpu.memref_slice %arg3[%10, %c0_i32_12] : memref<16x32xf32, #tpu.memory_space<any>> -> memref<1x32xf32, #tpu.memory_space<any>>
    %c1_i32_13 = arith.constant 1 : i32
    %c0_i32_14 = arith.constant 0 : i32
    %13 = tpu.memref_slice %arg8[%c1_i32_13, %c0_i32_14] : memref<8x32xf32, #tpu.memory_space<vmem>> -> memref<1x32xf32, #tpu.memory_space<vmem>>
    %14 = tpu.memref_slice %arg10[%c0_i32_10, %c1_i32_11] : memref<2x8x!tpu.dma_semaphore, #tpu.memory_space<semaphore_mem>> -> memref<1x1x!tpu.dma_semaphore, #tpu.memory_space<semaphore_mem>>
    %15 = tpu.memref_squeeze %14 : memref<1x1x!tpu.dma_semaphore, #tpu.memory_space<semaphore_mem>> -> memref<!tpu.dma_semaphore, #tpu.memory_space<semaphore_mem>>
    tpu.enqueue_dma source(%12 : memref<1x32xf32, #tpu.memory_space<any>>) target(%13 : memref<1x32xf32, #tpu.memory_space<vmem>>) target_semaphore(%15 : memref<!tpu.dma_semaphore, #tpu.memory_space<semaphore_mem>>)
    %c1_i32_15 = arith.constant 1 : i32
    %c1_i32_16 = arith.constant 1 : i32
    %c0_i32_17 = arith.constant 0 : i32
    %16 = tpu.memref_slice %arg4[%11, %c0_i32_17] : memref<16x32xf32, #tpu.memory_space<any>> -> memref<1x32xf32, #tpu.memory_space<any>>
    %c1_i32_18 = arith.constant 1 : i32
    %c0_i32_19 = arith.constant 0 : i32
    %17 = tpu.memref_slice %arg9[%c1_i32_18, %c0_i32_19] : memref<8x32xf32, #tpu.memory_space<vmem>> -> memref<1x32xf32, #tpu.memory_space<vmem>>
    %18 = tpu.memref_slice %arg10[%c1_i32_15, %c1_i32_16] : memref<2x8x!tpu.dma_semaphore, #tpu.memory_space<semaphore_mem>> -> memref<1x1x!tpu.dma_semaphore, #tpu.memory_space<semaphore_mem>>
    %19 = tpu.memref_squeeze %18 : memref<1x1x!tpu.dma_semaphore, #tpu.memory_space<semaphore_mem>> -> memref<!tpu.dma_semaphore, #tpu.memory_space<semaphore_mem>>
    tpu.enqueue_dma source(%16 : memref<1x32xf32, #tpu.memory_space<any>>) target(%17 : memref<1x32xf32, #tpu.memory_space<vmem>>) target_semaphore(%19 : memref<!tpu.dma_semaphore, #tpu.memory_space<semaphore_mem>>)
    %c2 = arith.constant 2 : index
    %20 = memref.load %arg1[%c2] : memref<8xi32, #tpu.memory_space<smem>>
    %c2_20 = arith.constant 2 : index
    %21 = memref.load %arg2[%c2_20] : memref<8xi32, #tpu.memory_space<smem>>
    %c0_i32_21 = arith.constant 0 : i32
    %c2_i32 = arith.constant 2 : i32
    %c0_i32_22 = arith.constant 0 : i32
    %22 = tpu.memref_slice %arg3[%20, %c0_i32_22] : memref<16x32xf32, #tpu.memory_space<any>> -> memref<1x32xf32, #tpu.memory_space<any>>
    %c2_i32_23 = arith.constant 2 : i32
    %c0_i32_24 = arith.constant 0 : i32
    %23 = tpu.memref_slice %arg8[%c2_i32_23, %c0_i32_24] : memref<8x32xf32, #tpu.memory_space<vmem>> -> memref<1x32xf32, #tpu.memory_space<vmem>>
    %24 = tpu.memref_slice %arg10[%c0_i32_21, %c2_i32] : memref<2x8x!tpu.dma_semaphore, #tpu.memory_space<semaphore_mem>> -> memref<1x1x!tpu.dma_semaphore, #tpu.memory_space<semaphore_mem>>
    %25 = tpu.memref_squeeze %24 : memref<1x1x!tpu.dma_semaphore, #tpu.memory_space<semaphore_mem>> -> memref<!tpu.dma_semaphore, #tpu.memory_space<semaphore_mem>>
    tpu.enqueue_dma source(%22 : memref<1x32xf32, #tpu.memory_space<any>>) target(%23 : memref<1x32xf32, #tpu.memory_space<vmem>>) target_semaphore(%25 : memref<!tpu.dma_semaphore, #tpu.memory_space<semaphore_mem>>)
    %c1_i32_25 = arith.constant 1 : i32
    %c2_i32_26 = arith.constant 2 : i32
    %c0_i32_27 = arith.constant 0 : i32
    %26 = tpu.memref_slice %arg4[%21, %c0_i32_27] : memref<16x32xf32, #tpu.memory_space<any>> -> memref<1x32xf32, #tpu.memory_space<any>>
    %c2_i32_28 = arith.constant 2 : i32
    %c0_i32_29 = arith.constant 0 : i32
    %27 = tpu.memref_slice %arg9[%c2_i32_28, %c0_i32_29] : memref<8x32xf32, #tpu.memory_space<vmem>> -> memref<1x32xf32, #tpu.memory_space<vmem>>
    %28 = tpu.memref_slice %arg10[%c1_i32_25, %c2_i32_26] : memref<2x8x!tpu.dma_semaphore, #tpu.memory_space<semaphore_mem>> -> memref<1x1x!tpu.dma_semaphore, #tpu.memory_space<semaphore_mem>>
    %29 = tpu.memref_squeeze %28 : memref<1x1x!tpu.dma_semaphore, #tpu.memory_space<semaphore_mem>> -> memref<!tpu.dma_semaphore, #tpu.memory_space<semaphore_mem>>
    tpu.enqueue_dma source(%26 : memref<1x32xf32, #tpu.memory_space<any>>) target(%27 : memref<1x32xf32, #tpu.memory_space<vmem>>) target_semaphore(%29 : memref<!tpu.dma_semaphore, #tpu.memory_space<semaphore_mem>>)
    %c3 = arith.constant 3 : index
    %30 = memref.load %arg1[%c3] : memref<8xi32, #tpu.memory_space<smem>>
    %c3_30 = arith.constant 3 : index
    %31 = memref.load %arg2[%c3_30] : memref<8xi32, #tpu.memory_space<smem>>
    %c0_i32_31 = arith.constant 0 : i32
    %c3_i32 = arith.constant 3 : i32
    %c0_i32_32 = arith.constant 0 : i32
    %32 = tpu.memref_slice %arg3[%30, %c0_i32_32] : memref<16x32xf32, #tpu.memory_space<any>> -> memref<1x32xf32, #tpu.memory_space<any>>
    %c3_i32_33 = arith.constant 3 : i32
    %c0_i32_34 = arith.constant 0 : i32
    %33 = tpu.memref_slice %arg8[%c3_i32_33, %c0_i32_34] : memref<8x32xf32, #tpu.memory_space<vmem>> -> memref<1x32xf32, #tpu.memory_space<vmem>>
    %34 = tpu.memref_slice %arg10[%c0_i32_31, %c3_i32] : memref<2x8x!tpu.dma_semaphore, #tpu.memory_space<semaphore_mem>> -> memref<1x1x!tpu.dma_semaphore, #tpu.memory_space<semaphore_mem>>
    %35 = tpu.memref_squeeze %34 : memref<1x1x!tpu.dma_semaphore, #tpu.memory_space<semaphore_mem>> -> memref<!tpu.dma_semaphore, #tpu.memory_space<semaphore_mem>>
    tpu.enqueue_dma source(%32 : memref<1x32xf32, #tpu.memory_space<any>>) target(%33 : memref<1x32xf32, #tpu.memory_space<vmem>>) target_semaphore(%35 : memref<!tpu.dma_semaphore, #tpu.memory_space<semaphore_mem>>)
    %c1_i32_35 = arith.constant 1 : i32
    %c3_i32_36 = arith.constant 3 : i32
    %c0_i32_37 = arith.constant 0 : i32
    %36 = tpu.memref_slice %arg4[%31, %c0_i32_37] : memref<16x32xf32, #tpu.memory_space<any>> -> memref<1x32xf32, #tpu.memory_space<any>>
    %c3_i32_38 = arith.constant 3 : i32
    %c0_i32_39 = arith.constant 0 : i32
    %37 = tpu.memref_slice %arg9[%c3_i32_38, %c0_i32_39] : memref<8x32xf32, #tpu.memory_space<vmem>> -> memref<1x32xf32, #tpu.memory_space<vmem>>
    %38 = tpu.memref_slice %arg10[%c1_i32_35, %c3_i32_36] : memref<2x8x!tpu.dma_semaphore, #tpu.memory_space<semaphore_mem>> -> memref<1x1x!tpu.dma_semaphore, #tpu.memory_space<semaphore_mem>>
    %39 = tpu.memref_squeeze %38 : memref<1x1x!tpu.dma_semaphore, #tpu.memory_space<semaphore_mem>> -> memref<!tpu.dma_semaphore, #tpu.memory_space<semaphore_mem>>
    tpu.enqueue_dma source(%36 : memref<1x32xf32, #tpu.memory_space<any>>) target(%37 : memref<1x32xf32, #tpu.memory_space<vmem>>) target_semaphore(%39 : memref<!tpu.dma_semaphore, #tpu.memory_space<semaphore_mem>>)
    %c4 = arith.constant 4 : index
    %40 = memref.load %arg1[%c4] : memref<8xi32, #tpu.memory_space<smem>>
    %c4_40 = arith.constant 4 : index
    %41 = memref.load %arg2[%c4_40] : memref<8xi32, #tpu.memory_space<smem>>
    %c0_i32_41 = arith.constant 0 : i32
    %c4_i32 = arith.constant 4 : i32
    %c0_i32_42 = arith.constant 0 : i32
    %42 = tpu.memref_slice %arg3[%40, %c0_i32_42] : memref<16x32xf32, #tpu.memory_space<any>> -> memref<1x32xf32, #tpu.memory_space<any>>
    %c4_i32_43 = arith.constant 4 : i32
    %c0_i32_44 = arith.constant 0 : i32
    %43 = tpu.memref_slice %arg8[%c4_i32_43, %c0_i32_44] : memref<8x32xf32, #tpu.memory_space<vmem>> -> memref<1x32xf32, #tpu.memory_space<vmem>>
    %44 = tpu.memref_slice %arg10[%c0_i32_41, %c4_i32] : memref<2x8x!tpu.dma_semaphore, #tpu.memory_space<semaphore_mem>> -> memref<1x1x!tpu.dma_semaphore, #tpu.memory_space<semaphore_mem>>
    %45 = tpu.memref_squeeze %44 : memref<1x1x!tpu.dma_semaphore, #tpu.memory_space<semaphore_mem>> -> memref<!tpu.dma_semaphore, #tpu.memory_space<semaphore_mem>>
    tpu.enqueue_dma source(%42 : memref<1x32xf32, #tpu.memory_space<any>>) target(%43 : memref<1x32xf32, #tpu.memory_space<vmem>>) target_semaphore(%45 : memref<!tpu.dma_semaphore, #tpu.memory_space<semaphore_mem>>)
    %c1_i32_45 = arith.constant 1 : i32
    %c4_i32_46 = arith.constant 4 : i32
    %c0_i32_47 = arith.constant 0 : i32
    %46 = tpu.memref_slice %arg4[%41, %c0_i32_47] : memref<16x32xf32, #tpu.memory_space<any>> -> memref<1x32xf32, #tpu.memory_space<any>>
    %c4_i32_48 = arith.constant 4 : i32
    %c0_i32_49 = arith.constant 0 : i32
    %47 = tpu.memref_slice %arg9[%c4_i32_48, %c0_i32_49] : memref<8x32xf32, #tpu.memory_space<vmem>> -> memref<1x32xf32, #tpu.memory_space<vmem>>
    %48 = tpu.memref_slice %arg10[%c1_i32_45, %c4_i32_46] : memref<2x8x!tpu.dma_semaphore, #tpu.memory_space<semaphore_mem>> -> memref<1x1x!tpu.dma_semaphore, #tpu.memory_space<semaphore_mem>>
    %49 = tpu.memref_squeeze %48 : memref<1x1x!tpu.dma_semaphore, #tpu.memory_space<semaphore_mem>> -> memref<!tpu.dma_semaphore, #tpu.memory_space<semaphore_mem>>
    tpu.enqueue_dma source(%46 : memref<1x32xf32, #tpu.memory_space<any>>) target(%47 : memref<1x32xf32, #tpu.memory_space<vmem>>) target_semaphore(%49 : memref<!tpu.dma_semaphore, #tpu.memory_space<semaphore_mem>>)
    %c5 = arith.constant 5 : index
    %50 = memref.load %arg1[%c5] : memref<8xi32, #tpu.memory_space<smem>>
    %c5_50 = arith.constant 5 : index
    %51 = memref.load %arg2[%c5_50] : memref<8xi32, #tpu.memory_space<smem>>
    %c0_i32_51 = arith.constant 0 : i32
    %c5_i32 = arith.constant 5 : i32
    %c0_i32_52 = arith.constant 0 : i32
    %52 = tpu.memref_slice %arg3[%50, %c0_i32_52] : memref<16x32xf32, #tpu.memory_space<any>> -> memref<1x32xf32, #tpu.memory_space<any>>
    %c5_i32_53 = arith.constant 5 : i32
    %c0_i32_54 = arith.constant 0 : i32
    %53 = tpu.memref_slice %arg8[%c5_i32_53, %c0_i32_54] : memref<8x32xf32, #tpu.memory_space<vmem>> -> memref<1x32xf32, #tpu.memory_space<vmem>>
    %54 = tpu.memref_slice %arg10[%c0_i32_51, %c5_i32] : memref<2x8x!tpu.dma_semaphore, #tpu.memory_space<semaphore_mem>> -> memref<1x1x!tpu.dma_semaphore, #tpu.memory_space<semaphore_mem>>
    %55 = tpu.memref_squeeze %54 : memref<1x1x!tpu.dma_semaphore, #tpu.memory_space<semaphore_mem>> -> memref<!tpu.dma_semaphore, #tpu.memory_space<semaphore_mem>>
    tpu.enqueue_dma source(%52 : memref<1x32xf32, #tpu.memory_space<any>>) target(%53 : memref<1x32xf32, #tpu.memory_space<vmem>>) target_semaphore(%55 : memref<!tpu.dma_semaphore, #tpu.memory_space<semaphore_mem>>)
    %c1_i32_55 = arith.constant 1 : i32
    %c5_i32_56 = arith.constant 5 : i32
    %c0_i32_57 = arith.constant 0 : i32
    %56 = tpu.memref_slice %arg4[%51, %c0_i32_57] : memref<16x32xf32, #tpu.memory_space<any>> -> memref<1x32xf32, #tpu.memory_space<any>>
    %c5_i32_58 = arith.constant 5 : i32
    %c0_i32_59 = arith.constant 0 : i32
    %57 = tpu.memref_slice %arg9[%c5_i32_58, %c0_i32_59] : memref<8x32xf32, #tpu.memory_space<vmem>> -> memref<1x32xf32, #tpu.memory_space<vmem>>
    %58 = tpu.memref_slice %arg10[%c1_i32_55, %c5_i32_56] : memref<2x8x!tpu.dma_semaphore, #tpu.memory_space<semaphore_mem>> -> memref<1x1x!tpu.dma_semaphore, #tpu.memory_space<semaphore_mem>>
    %59 = tpu.memref_squeeze %58 : memref<1x1x!tpu.dma_semaphore, #tpu.memory_space<semaphore_mem>> -> memref<!tpu.dma_semaphore, #tpu.memory_space<semaphore_mem>>
    tpu.enqueue_dma source(%56 : memref<1x32xf32, #tpu.memory_space<any>>) target(%57 : memref<1x32xf32, #tpu.memory_space<vmem>>) target_semaphore(%59 : memref<!tpu.dma_semaphore, #tpu.memory_space<semaphore_mem>>)
    %c6 = arith.constant 6 : index
    %60 = memref.load %arg1[%c6] : memref<8xi32, #tpu.memory_space<smem>>
    %c6_60 = arith.constant 6 : index
    %61 = memref.load %arg2[%c6_60] : memref<8xi32, #tpu.memory_space<smem>>
    %c0_i32_61 = arith.constant 0 : i32
    %c6_i32 = arith.constant 6 : i32
    %c0_i32_62 = arith.constant 0 : i32
    %62 = tpu.memref_slice %arg3[%60, %c0_i32_62] : memref<16x32xf32, #tpu.memory_space<any>> -> memref<1x32xf32, #tpu.memory_space<any>>
    %c6_i32_63 = arith.constant 6 : i32
    %c0_i32_64 = arith.constant 0 : i32
    %63 = tpu.memref_slice %arg8[%c6_i32_63, %c0_i32_64] : memref<8x32xf32, #tpu.memory_space<vmem>> -> memref<1x32xf32, #tpu.memory_space<vmem>>
    %64 = tpu.memref_slice %arg10[%c0_i32_61, %c6_i32] : memref<2x8x!tpu.dma_semaphore, #tpu.memory_space<semaphore_mem>> -> memref<1x1x!tpu.dma_semaphore, #tpu.memory_space<semaphore_mem>>
    %65 = tpu.memref_squeeze %64 : memref<1x1x!tpu.dma_semaphore, #tpu.memory_space<semaphore_mem>> -> memref<!tpu.dma_semaphore, #tpu.memory_space<semaphore_mem>>
    tpu.enqueue_dma source(%62 : memref<1x32xf32, #tpu.memory_space<any>>) target(%63 : memref<1x32xf32, #tpu.memory_space<vmem>>) target_semaphore(%65 : memref<!tpu.dma_semaphore, #tpu.memory_space<semaphore_mem>>)
    %c1_i32_65 = arith.constant 1 : i32
    %c6_i32_66 = arith.constant 6 : i32
    %c0_i32_67 = arith.constant 0 : i32
    %66 = tpu.memref_slice %arg4[%61, %c0_i32_67] : memref<16x32xf32, #tpu.memory_space<any>> -> memref<1x32xf32, #tpu.memory_space<any>>
    %c6_i32_68 = arith.constant 6 : i32
    %c0_i32_69 = arith.constant 0 : i32
    %67 = tpu.memref_slice %arg9[%c6_i32_68, %c0_i32_69] : memref<8x32xf32, #tpu.memory_space<vmem>> -> memref<1x32xf32, #tpu.memory_space<vmem>>
    %68 = tpu.memref_slice %arg10[%c1_i32_65, %c6_i32_66] : memref<2x8x!tpu.dma_semaphore, #tpu.memory_space<semaphore_mem>> -> memref<1x1x!tpu.dma_semaphore, #tpu.memory_space<semaphore_mem>>
    %69 = tpu.memref_squeeze %68 : memref<1x1x!tpu.dma_semaphore, #tpu.memory_space<semaphore_mem>> -> memref<!tpu.dma_semaphore, #tpu.memory_space<semaphore_mem>>
    tpu.enqueue_dma source(%66 : memref<1x32xf32, #tpu.memory_space<any>>) target(%67 : memref<1x32xf32, #tpu.memory_space<vmem>>) target_semaphore(%69 : memref<!tpu.dma_semaphore, #tpu.memory_space<semaphore_mem>>)
    %c7 = arith.constant 7 : index
    %70 = memref.load %arg1[%c7] : memref<8xi32, #tpu.memory_space<smem>>
    %c7_70 = arith.constant 7 : index
    %71 = memref.load %arg2[%c7_70] : memref<8xi32, #tpu.memory_space<smem>>
    %c0_i32_71 = arith.constant 0 : i32
    %c7_i32 = arith.constant 7 : i32
    %c0_i32_72 = arith.constant 0 : i32
    %72 = tpu.memref_slice %arg3[%70, %c0_i32_72] : memref<16x32xf32, #tpu.memory_space<any>> -> memref<1x32xf32, #tpu.memory_space<any>>
    %c7_i32_73 = arith.constant 7 : i32
    %c0_i32_74 = arith.constant 0 : i32
    %73 = tpu.memref_slice %arg8[%c7_i32_73, %c0_i32_74] : memref<8x32xf32, #tpu.memory_space<vmem>> -> memref<1x32xf32, #tpu.memory_space<vmem>>
    %74 = tpu.memref_slice %arg10[%c0_i32_71, %c7_i32] : memref<2x8x!tpu.dma_semaphore, #tpu.memory_space<semaphore_mem>> -> memref<1x1x!tpu.dma_semaphore, #tpu.memory_space<semaphore_mem>>
    %75 = tpu.memref_squeeze %74 : memref<1x1x!tpu.dma_semaphore, #tpu.memory_space<semaphore_mem>> -> memref<!tpu.dma_semaphore, #tpu.memory_space<semaphore_mem>>
    tpu.enqueue_dma source(%72 : memref<1x32xf32, #tpu.memory_space<any>>) target(%73 : memref<1x32xf32, #tpu.memory_space<vmem>>) target_semaphore(%75 : memref<!tpu.dma_semaphore, #tpu.memory_space<semaphore_mem>>)
    %c1_i32_75 = arith.constant 1 : i32
    %c7_i32_76 = arith.constant 7 : i32
    %c0_i32_77 = arith.constant 0 : i32
    %76 = tpu.memref_slice %arg4[%71, %c0_i32_77] : memref<16x32xf32, #tpu.memory_space<any>> -> memref<1x32xf32, #tpu.memory_space<any>>
    %c7_i32_78 = arith.constant 7 : i32
    %c0_i32_79 = arith.constant 0 : i32
    %77 = tpu.memref_slice %arg9[%c7_i32_78, %c0_i32_79] : memref<8x32xf32, #tpu.memory_space<vmem>> -> memref<1x32xf32, #tpu.memory_space<vmem>>
    %78 = tpu.memref_slice %arg10[%c1_i32_75, %c7_i32_76] : memref<2x8x!tpu.dma_semaphore, #tpu.memory_space<semaphore_mem>> -> memref<1x1x!tpu.dma_semaphore, #tpu.memory_space<semaphore_mem>>
    %79 = tpu.memref_squeeze %78 : memref<1x1x!tpu.dma_semaphore, #tpu.memory_space<semaphore_mem>> -> memref<!tpu.dma_semaphore, #tpu.memory_space<semaphore_mem>>
    tpu.enqueue_dma source(%76 : memref<1x32xf32, #tpu.memory_space<any>>) target(%77 : memref<1x32xf32, #tpu.memory_space<vmem>>) target_semaphore(%79 : memref<!tpu.dma_semaphore, #tpu.memory_space<semaphore_mem>>)
    %c0_i32_80 = arith.constant 0 : i32
    %c0_i32_81 = arith.constant 0 : i32
    %c0_i32_82 = arith.constant 0 : i32
    %80 = tpu.memref_slice %arg3[%0, %c0_i32_82] : memref<16x32xf32, #tpu.memory_space<any>> -> memref<1x32xf32, #tpu.memory_space<any>>
    %c0_i32_83 = arith.constant 0 : i32
    %c0_i32_84 = arith.constant 0 : i32
    %81 = tpu.memref_slice %arg8[%c0_i32_83, %c0_i32_84] : memref<8x32xf32, #tpu.memory_space<vmem>> -> memref<1x32xf32, #tpu.memory_space<vmem>>
    %82 = tpu.memref_slice %arg10[%c0_i32_80, %c0_i32_81] : memref<2x8x!tpu.dma_semaphore, #tpu.memory_space<semaphore_mem>> -> memref<1x1x!tpu.dma_semaphore, #tpu.memory_space<semaphore_mem>>
    %83 = tpu.memref_squeeze %82 : memref<1x1x!tpu.dma_semaphore, #tpu.memory_space<semaphore_mem>> -> memref<!tpu.dma_semaphore, #tpu.memory_space<semaphore_mem>>
    tpu.wait_dma2 semaphore(%83 : memref<!tpu.dma_semaphore, #tpu.memory_space<semaphore_mem>>) src(%80 : memref<1x32xf32, #tpu.memory_space<any>>) dst(%81 : memref<1x32xf32, #tpu.memory_space<vmem>>)
    %c1_i32_85 = arith.constant 1 : i32
    %c0_i32_86 = arith.constant 0 : i32
    %c0_i32_87 = arith.constant 0 : i32
    %84 = tpu.memref_slice %arg4[%1, %c0_i32_87] : memref<16x32xf32, #tpu.memory_space<any>> -> memref<1x32xf32, #tpu.memory_space<any>>
    %c0_i32_88 = arith.constant 0 : i32
    %c0_i32_89 = arith.constant 0 : i32
    %85 = tpu.memref_slice %arg9[%c0_i32_88, %c0_i32_89] : memref<8x32xf32, #tpu.memory_space<vmem>> -> memref<1x32xf32, #tpu.memory_space<vmem>>
    %86 = tpu.memref_slice %arg10[%c1_i32_85, %c0_i32_86] : memref<2x8x!tpu.dma_semaphore, #tpu.memory_space<semaphore_mem>> -> memref<1x1x!tpu.dma_semaphore, #tpu.memory_space<semaphore_mem>>
    %87 = tpu.memref_squeeze %86 : memref<1x1x!tpu.dma_semaphore, #tpu.memory_space<semaphore_mem>> -> memref<!tpu.dma_semaphore, #tpu.memory_space<semaphore_mem>>
    tpu.wait_dma2 semaphore(%87 : memref<!tpu.dma_semaphore, #tpu.memory_space<semaphore_mem>>) src(%84 : memref<1x32xf32, #tpu.memory_space<any>>) dst(%85 : memref<1x32xf32, #tpu.memory_space<vmem>>)
    %c0_i32_90 = arith.constant 0 : i32
    %c1_i32_91 = arith.constant 1 : i32
    %c0_i32_92 = arith.constant 0 : i32
    %88 = tpu.memref_slice %arg3[%10, %c0_i32_92] : memref<16x32xf32, #tpu.memory_space<any>> -> memref<1x32xf32, #tpu.memory_space<any>>
    %c1_i32_93 = arith.constant 1 : i32
    %c0_i32_94 = arith.constant 0 : i32
    %89 = tpu.memref_slice %arg8[%c1_i32_93, %c0_i32_94] : memref<8x32xf32, #tpu.memory_space<vmem>> -> memref<1x32xf32, #tpu.memory_space<vmem>>
    %90 = tpu.memref_slice %arg10[%c0_i32_90, %c1_i32_91] : memref<2x8x!tpu.dma_semaphore, #tpu.memory_space<semaphore_mem>> -> memref<1x1x!tpu.dma_semaphore, #tpu.memory_space<semaphore_mem>>
    %91 = tpu.memref_squeeze %90 : memref<1x1x!tpu.dma_semaphore, #tpu.memory_space<semaphore_mem>> -> memref<!tpu.dma_semaphore, #tpu.memory_space<semaphore_mem>>
    tpu.wait_dma2 semaphore(%91 : memref<!tpu.dma_semaphore, #tpu.memory_space<semaphore_mem>>) src(%88 : memref<1x32xf32, #tpu.memory_space<any>>) dst(%89 : memref<1x32xf32, #tpu.memory_space<vmem>>)
    %c1_i32_95 = arith.constant 1 : i32
    %c1_i32_96 = arith.constant 1 : i32
    %c0_i32_97 = arith.constant 0 : i32
    %92 = tpu.memref_slice %arg4[%11, %c0_i32_97] : memref<16x32xf32, #tpu.memory_space<any>> -> memref<1x32xf32, #tpu.memory_space<any>>
    %c1_i32_98 = arith.constant 1 : i32
    %c0_i32_99 = arith.constant 0 : i32
    %93 = tpu.memref_slice %arg9[%c1_i32_98, %c0_i32_99] : memref<8x32xf32, #tpu.memory_space<vmem>> -> memref<1x32xf32, #tpu.memory_space<vmem>>
    %94 = tpu.memref_slice %arg10[%c1_i32_95, %c1_i32_96] : memref<2x8x!tpu.dma_semaphore, #tpu.memory_space<semaphore_mem>> -> memref<1x1x!tpu.dma_semaphore, #tpu.memory_space<semaphore_mem>>
    %95 = tpu.memref_squeeze %94 : memref<1x1x!tpu.dma_semaphore, #tpu.memory_space<semaphore_mem>> -> memref<!tpu.dma_semaphore, #tpu.memory_space<semaphore_mem>>
    tpu.wait_dma2 semaphore(%95 : memref<!tpu.dma_semaphore, #tpu.memory_space<semaphore_mem>>) src(%92 : memref<1x32xf32, #tpu.memory_space<any>>) dst(%93 : memref<1x32xf32, #tpu.memory_space<vmem>>)
    %c0_i32_100 = arith.constant 0 : i32
    %c2_i32_101 = arith.constant 2 : i32
    %c0_i32_102 = arith.constant 0 : i32
    %96 = tpu.memref_slice %arg3[%20, %c0_i32_102] : memref<16x32xf32, #tpu.memory_space<any>> -> memref<1x32xf32, #tpu.memory_space<any>>
    %c2_i32_103 = arith.constant 2 : i32
    %c0_i32_104 = arith.constant 0 : i32
    %97 = tpu.memref_slice %arg8[%c2_i32_103, %c0_i32_104] : memref<8x32xf32, #tpu.memory_space<vmem>> -> memref<1x32xf32, #tpu.memory_space<vmem>>
    %98 = tpu.memref_slice %arg10[%c0_i32_100, %c2_i32_101] : memref<2x8x!tpu.dma_semaphore, #tpu.memory_space<semaphore_mem>> -> memref<1x1x!tpu.dma_semaphore, #tpu.memory_space<semaphore_mem>>
    %99 = tpu.memref_squeeze %98 : memref<1x1x!tpu.dma_semaphore, #tpu.memory_space<semaphore_mem>> -> memref<!tpu.dma_semaphore, #tpu.memory_space<semaphore_mem>>
    tpu.wait_dma2 semaphore(%99 : memref<!tpu.dma_semaphore, #tpu.memory_space<semaphore_mem>>) src(%96 : memref<1x32xf32, #tpu.memory_space<any>>) dst(%97 : memref<1x32xf32, #tpu.memory_space<vmem>>)
    %c1_i32_105 = arith.constant 1 : i32
    %c2_i32_106 = arith.constant 2 : i32
    %c0_i32_107 = arith.constant 0 : i32
    %100 = tpu.memref_slice %arg4[%21, %c0_i32_107] : memref<16x32xf32, #tpu.memory_space<any>> -> memref<1x32xf32, #tpu.memory_space<any>>
    %c2_i32_108 = arith.constant 2 : i32
    %c0_i32_109 = arith.constant 0 : i32
    %101 = tpu.memref_slice %arg9[%c2_i32_108, %c0_i32_109] : memref<8x32xf32, #tpu.memory_space<vmem>> -> memref<1x32xf32, #tpu.memory_space<vmem>>
    %102 = tpu.memref_slice %arg10[%c1_i32_105, %c2_i32_106] : memref<2x8x!tpu.dma_semaphore, #tpu.memory_space<semaphore_mem>> -> memref<1x1x!tpu.dma_semaphore, #tpu.memory_space<semaphore_mem>>
    %103 = tpu.memref_squeeze %102 : memref<1x1x!tpu.dma_semaphore, #tpu.memory_space<semaphore_mem>> -> memref<!tpu.dma_semaphore, #tpu.memory_space<semaphore_mem>>
    tpu.wait_dma2 semaphore(%103 : memref<!tpu.dma_semaphore, #tpu.memory_space<semaphore_mem>>) src(%100 : memref<1x32xf32, #tpu.memory_space<any>>) dst(%101 : memref<1x32xf32, #tpu.memory_space<vmem>>)
    %c0_i32_110 = arith.constant 0 : i32
    %c3_i32_111 = arith.constant 3 : i32
    %c0_i32_112 = arith.constant 0 : i32
    %104 = tpu.memref_slice %arg3[%30, %c0_i32_112] : memref<16x32xf32, #tpu.memory_space<any>> -> memref<1x32xf32, #tpu.memory_space<any>>
    %c3_i32_113 = arith.constant 3 : i32
    %c0_i32_114 = arith.constant 0 : i32
    %105 = tpu.memref_slice %arg8[%c3_i32_113, %c0_i32_114] : memref<8x32xf32, #tpu.memory_space<vmem>> -> memref<1x32xf32, #tpu.memory_space<vmem>>
    %106 = tpu.memref_slice %arg10[%c0_i32_110, %c3_i32_111] : memref<2x8x!tpu.dma_semaphore, #tpu.memory_space<semaphore_mem>> -> memref<1x1x!tpu.dma_semaphore, #tpu.memory_space<semaphore_mem>>
    %107 = tpu.memref_squeeze %106 : memref<1x1x!tpu.dma_semaphore, #tpu.memory_space<semaphore_mem>> -> memref<!tpu.dma_semaphore, #tpu.memory_space<semaphore_mem>>
    tpu.wait_dma2 semaphore(%107 : memref<!tpu.dma_semaphore, #tpu.memory_space<semaphore_mem>>) src(%104 : memref<1x32xf32, #tpu.memory_space<any>>) dst(%105 : memref<1x32xf32, #tpu.memory_space<vmem>>)
    %c1_i32_115 = arith.constant 1 : i32
    %c3_i32_116 = arith.constant 3 : i32
    %c0_i32_117 = arith.constant 0 : i32
    %108 = tpu.memref_slice %arg4[%31, %c0_i32_117] : memref<16x32xf32, #tpu.memory_space<any>> -> memref<1x32xf32, #tpu.memory_space<any>>
    %c3_i32_118 = arith.constant 3 : i32
    %c0_i32_119 = arith.constant 0 : i32
    %109 = tpu.memref_slice %arg9[%c3_i32_118, %c0_i32_119] : memref<8x32xf32, #tpu.memory_space<vmem>> -> memref<1x32xf32, #tpu.memory_space<vmem>>
    %110 = tpu.memref_slice %arg10[%c1_i32_115, %c3_i32_116] : memref<2x8x!tpu.dma_semaphore, #tpu.memory_space<semaphore_mem>> -> memref<1x1x!tpu.dma_semaphore, #tpu.memory_space<semaphore_mem>>
    %111 = tpu.memref_squeeze %110 : memref<1x1x!tpu.dma_semaphore, #tpu.memory_space<semaphore_mem>> -> memref<!tpu.dma_semaphore, #tpu.memory_space<semaphore_mem>>
    tpu.wait_dma2 semaphore(%111 : memref<!tpu.dma_semaphore, #tpu.memory_space<semaphore_mem>>) src(%108 : memref<1x32xf32, #tpu.memory_space<any>>) dst(%109 : memref<1x32xf32, #tpu.memory_space<vmem>>)
    %c0_i32_120 = arith.constant 0 : i32
    %c4_i32_121 = arith.constant 4 : i32
    %c0_i32_122 = arith.constant 0 : i32
    %112 = tpu.memref_slice %arg3[%40, %c0_i32_122] : memref<16x32xf32, #tpu.memory_space<any>> -> memref<1x32xf32, #tpu.memory_space<any>>
    %c4_i32_123 = arith.constant 4 : i32
    %c0_i32_124 = arith.constant 0 : i32
    %113 = tpu.memref_slice %arg8[%c4_i32_123, %c0_i32_124] : memref<8x32xf32, #tpu.memory_space<vmem>> -> memref<1x32xf32, #tpu.memory_space<vmem>>
    %114 = tpu.memref_slice %arg10[%c0_i32_120, %c4_i32_121] : memref<2x8x!tpu.dma_semaphore, #tpu.memory_space<semaphore_mem>> -> memref<1x1x!tpu.dma_semaphore, #tpu.memory_space<semaphore_mem>>
    %115 = tpu.memref_squeeze %114 : memref<1x1x!tpu.dma_semaphore, #tpu.memory_space<semaphore_mem>> -> memref<!tpu.dma_semaphore, #tpu.memory_space<semaphore_mem>>
    tpu.wait_dma2 semaphore(%115 : memref<!tpu.dma_semaphore, #tpu.memory_space<semaphore_mem>>) src(%112 : memref<1x32xf32, #tpu.memory_space<any>>) dst(%113 : memref<1x32xf32, #tpu.memory_space<vmem>>)
    %c1_i32_125 = arith.constant 1 : i32
    %c4_i32_126 = arith.constant 4 : i32
    %c0_i32_127 = arith.constant 0 : i32
    %116 = tpu.memref_slice %arg4[%41, %c0_i32_127] : memref<16x32xf32, #tpu.memory_space<any>> -> memref<1x32xf32, #tpu.memory_space<any>>
    %c4_i32_128 = arith.constant 4 : i32
    %c0_i32_129 = arith.constant 0 : i32
    %117 = tpu.memref_slice %arg9[%c4_i32_128, %c0_i32_129] : memref<8x32xf32, #tpu.memory_space<vmem>> -> memref<1x32xf32, #tpu.memory_space<vmem>>
    %118 = tpu.memref_slice %arg10[%c1_i32_125, %c4_i32_126] : memref<2x8x!tpu.dma_semaphore, #tpu.memory_space<semaphore_mem>> -> memref<1x1x!tpu.dma_semaphore, #tpu.memory_space<semaphore_mem>>
    %119 = tpu.memref_squeeze %118 : memref<1x1x!tpu.dma_semaphore, #tpu.memory_space<semaphore_mem>> -> memref<!tpu.dma_semaphore, #tpu.memory_space<semaphore_mem>>
    tpu.wait_dma2 semaphore(%119 : memref<!tpu.dma_semaphore, #tpu.memory_space<semaphore_mem>>) src(%116 : memref<1x32xf32, #tpu.memory_space<any>>) dst(%117 : memref<1x32xf32, #tpu.memory_space<vmem>>)
    %c0_i32_130 = arith.constant 0 : i32
    %c5_i32_131 = arith.constant 5 : i32
    %c0_i32_132 = arith.constant 0 : i32
    %120 = tpu.memref_slice %arg3[%50, %c0_i32_132] : memref<16x32xf32, #tpu.memory_space<any>> -> memref<1x32xf32, #tpu.memory_space<any>>
    %c5_i32_133 = arith.constant 5 : i32
    %c0_i32_134 = arith.constant 0 : i32
    %121 = tpu.memref_slice %arg8[%c5_i32_133, %c0_i32_134] : memref<8x32xf32, #tpu.memory_space<vmem>> -> memref<1x32xf32, #tpu.memory_space<vmem>>
    %122 = tpu.memref_slice %arg10[%c0_i32_130, %c5_i32_131] : memref<2x8x!tpu.dma_semaphore, #tpu.memory_space<semaphore_mem>> -> memref<1x1x!tpu.dma_semaphore, #tpu.memory_space<semaphore_mem>>
    %123 = tpu.memref_squeeze %122 : memref<1x1x!tpu.dma_semaphore, #tpu.memory_space<semaphore_mem>> -> memref<!tpu.dma_semaphore, #tpu.memory_space<semaphore_mem>>
    tpu.wait_dma2 semaphore(%123 : memref<!tpu.dma_semaphore, #tpu.memory_space<semaphore_mem>>) src(%120 : memref<1x32xf32, #tpu.memory_space<any>>) dst(%121 : memref<1x32xf32, #tpu.memory_space<vmem>>)
    %c1_i32_135 = arith.constant 1 : i32
    %c5_i32_136 = arith.constant 5 : i32
    %c0_i32_137 = arith.constant 0 : i32
    %124 = tpu.memref_slice %arg4[%51, %c0_i32_137] : memref<16x32xf32, #tpu.memory_space<any>> -> memref<1x32xf32, #tpu.memory_space<any>>
    %c5_i32_138 = arith.constant 5 : i32
    %c0_i32_139 = arith.constant 0 : i32
    %125 = tpu.memref_slice %arg9[%c5_i32_138, %c0_i32_139] : memref<8x32xf32, #tpu.memory_space<vmem>> -> memref<1x32xf32, #tpu.memory_space<vmem>>
    %126 = tpu.memref_slice %arg10[%c1_i32_135, %c5_i32_136] : memref<2x8x!tpu.dma_semaphore, #tpu.memory_space<semaphore_mem>> -> memref<1x1x!tpu.dma_semaphore, #tpu.memory_space<semaphore_mem>>
    %127 = tpu.memref_squeeze %126 : memref<1x1x!tpu.dma_semaphore, #tpu.memory_space<semaphore_mem>> -> memref<!tpu.dma_semaphore, #tpu.memory_space<semaphore_mem>>
    tpu.wait_dma2 semaphore(%127 : memref<!tpu.dma_semaphore, #tpu.memory_space<semaphore_mem>>) src(%124 : memref<1x32xf32, #tpu.memory_space<any>>) dst(%125 : memref<1x32xf32, #tpu.memory_space<vmem>>)
    %c0_i32_140 = arith.constant 0 : i32
    %c6_i32_141 = arith.constant 6 : i32
    %c0_i32_142 = arith.constant 0 : i32
    %128 = tpu.memref_slice %arg3[%60, %c0_i32_142] : memref<16x32xf32, #tpu.memory_space<any>> -> memref<1x32xf32, #tpu.memory_space<any>>
    %c6_i32_143 = arith.constant 6 : i32
    %c0_i32_144 = arith.constant 0 : i32
    %129 = tpu.memref_slice %arg8[%c6_i32_143, %c0_i32_144] : memref<8x32xf32, #tpu.memory_space<vmem>> -> memref<1x32xf32, #tpu.memory_space<vmem>>
    %130 = tpu.memref_slice %arg10[%c0_i32_140, %c6_i32_141] : memref<2x8x!tpu.dma_semaphore, #tpu.memory_space<semaphore_mem>> -> memref<1x1x!tpu.dma_semaphore, #tpu.memory_space<semaphore_mem>>
    %131 = tpu.memref_squeeze %130 : memref<1x1x!tpu.dma_semaphore, #tpu.memory_space<semaphore_mem>> -> memref<!tpu.dma_semaphore, #tpu.memory_space<semaphore_mem>>
    tpu.wait_dma2 semaphore(%131 : memref<!tpu.dma_semaphore, #tpu.memory_space<semaphore_mem>>) src(%128 : memref<1x32xf32, #tpu.memory_space<any>>) dst(%129 : memref<1x32xf32, #tpu.memory_space<vmem>>)
    %c1_i32_145 = arith.constant 1 : i32
    %c6_i32_146 = arith.constant 6 : i32
    %c0_i32_147 = arith.constant 0 : i32
    %132 = tpu.memref_slice %arg4[%61, %c0_i32_147] : memref<16x32xf32, #tpu.memory_space<any>> -> memref<1x32xf32, #tpu.memory_space<any>>
    %c6_i32_148 = arith.constant 6 : i32
    %c0_i32_149 = arith.constant 0 : i32
    %133 = tpu.memref_slice %arg9[%c6_i32_148, %c0_i32_149] : memref<8x32xf32, #tpu.memory_space<vmem>> -> memref<1x32xf32, #tpu.memory_space<vmem>>
    %134 = tpu.memref_slice %arg10[%c1_i32_145, %c6_i32_146] : memref<2x8x!tpu.dma_semaphore, #tpu.memory_space<semaphore_mem>> -> memref<1x1x!tpu.dma_semaphore, #tpu.memory_space<semaphore_mem>>
    %135 = tpu.memref_squeeze %134 : memref<1x1x!tpu.dma_semaphore, #tpu.memory_space<semaphore_mem>> -> memref<!tpu.dma_semaphore, #tpu.memory_space<semaphore_mem>>
    tpu.wait_dma2 semaphore(%135 : memref<!tpu.dma_semaphore, #tpu.memory_space<semaphore_mem>>) src(%132 : memref<1x32xf32, #tpu.memory_space<any>>) dst(%133 : memref<1x32xf32, #tpu.memory_space<vmem>>)
    %c0_i32_150 = arith.constant 0 : i32
    %c7_i32_151 = arith.constant 7 : i32
    %c0_i32_152 = arith.constant 0 : i32
    %136 = tpu.memref_slice %arg3[%70, %c0_i32_152] : memref<16x32xf32, #tpu.memory_space<any>> -> memref<1x32xf32, #tpu.memory_space<any>>
    %c7_i32_153 = arith.constant 7 : i32
    %c0_i32_154 = arith.constant 0 : i32
    %137 = tpu.memref_slice %arg8[%c7_i32_153, %c0_i32_154] : memref<8x32xf32, #tpu.memory_space<vmem>> -> memref<1x32xf32, #tpu.memory_space<vmem>>
    %138 = tpu.memref_slice %arg10[%c0_i32_150, %c7_i32_151] : memref<2x8x!tpu.dma_semaphore, #tpu.memory_space<semaphore_mem>> -> memref<1x1x!tpu.dma_semaphore, #tpu.memory_space<semaphore_mem>>
    %139 = tpu.memref_squeeze %138 : memref<1x1x!tpu.dma_semaphore, #tpu.memory_space<semaphore_mem>> -> memref<!tpu.dma_semaphore, #tpu.memory_space<semaphore_mem>>
    tpu.wait_dma2 semaphore(%139 : memref<!tpu.dma_semaphore, #tpu.memory_space<semaphore_mem>>) src(%136 : memref<1x32xf32, #tpu.memory_space<any>>) dst(%137 : memref<1x32xf32, #tpu.memory_space<vmem>>)
    %c1_i32_155 = arith.constant 1 : i32
    %c7_i32_156 = arith.constant 7 : i32
    %c0_i32_157 = arith.constant 0 : i32
    %140 = tpu.memref_slice %arg4[%71, %c0_i32_157] : memref<16x32xf32, #tpu.memory_space<any>> -> memref<1x32xf32, #tpu.memory_space<any>>
    %c7_i32_158 = arith.constant 7 : i32
    %c0_i32_159 = arith.constant 0 : i32
    %141 = tpu.memref_slice %arg9[%c7_i32_158, %c0_i32_159] : memref<8x32xf32, #tpu.memory_space<vmem>> -> memref<1x32xf32, #tpu.memory_space<vmem>>
    %142 = tpu.memref_slice %arg10[%c1_i32_155, %c7_i32_156] : memref<2x8x!tpu.dma_semaphore, #tpu.memory_space<semaphore_mem>> -> memref<1x1x!tpu.dma_semaphore, #tpu.memory_space<semaphore_mem>>
    %143 = tpu.memref_squeeze %142 : memref<1x1x!tpu.dma_semaphore, #tpu.memory_space<semaphore_mem>> -> memref<!tpu.dma_semaphore, #tpu.memory_space<semaphore_mem>>
    tpu.wait_dma2 semaphore(%143 : memref<!tpu.dma_semaphore, #tpu.memory_space<semaphore_mem>>) src(%140 : memref<1x32xf32, #tpu.memory_space<any>>) dst(%141 : memref<1x32xf32, #tpu.memory_space<vmem>>)
    %c0_160 = arith.constant 0 : index
    %c0_161 = arith.constant 0 : index
    %144 = vector.load %arg9[%c0_160, %c0_161] : memref<8x32xf32, #tpu.memory_space<vmem>>, vector<8x32xf32>
    %c0_162 = arith.constant 0 : index
    %c0_163 = arith.constant 0 : index
    %145 = vector.load %arg5[%c0_162, %c0_163] : memref<32x32xf32, #tpu.memory_space<vmem>>, vector<32x32xf32>
    %cst = arith.constant dense<0.000000e+00> : vector<8x32xf32>
    %146 = tpu.matmul %144, %145, %cst {dimension_numbers = #tpu.dot_dimension_numbers<[1], [0], [0], [1], [0, 0, 1, 1], [], []>} : vector<8x32xf32>, vector<32x32xf32>, vector<8x32xf32> -> vector<8x32xf32>
    %c0_164 = arith.constant 0 : index
    %c0_165 = arith.constant 0 : index
    %147 = vector.load %arg6[%c0_164, %c0_165] : memref<1x32xf32, #tpu.memory_space<vmem>>, vector<1x32xf32>
    %148 = vector.broadcast %147 : vector<1x32xf32> to vector<8x32xf32>
    %149 = arith.addf %146, %148 : vector<8x32xf32>
    %c0_166 = arith.constant 0 : index
    %c0_167 = arith.constant 0 : index
    %150 = vector.load %arg8[%c0_166, %c0_167] : memref<8x32xf32, #tpu.memory_space<vmem>>, vector<8x32xf32>
    %151 = arith.subf %150, %149 : vector<8x32xf32>
    %cst_168 = arith.constant 9.99999997E-7 : f32
    %152 = vector.broadcast %cst_168 : f32 to vector<8x32xf32>
    %153 = arith.addf %151, %152 : vector<8x32xf32>
    %154 = arith.mulf %153, %153 : vector<8x32xf32>
    %cst_169 = arith.constant dense<0.000000e+00> : vector<8xf32>
    %155 = vector.multi_reduction <add>, %154, %cst_169 [1] : vector<8x32xf32> to vector<8xf32>
    %156 = vector.shape_cast %155 : vector<8xf32> to vector<8x1xf32>
    %157 = math.sqrt %156 : vector<8x1xf32>
    %158 = tpu.iota {dimensions = array<i32: 0>} : vector<8x1xi32>
    %c5_i32_170 = arith.constant 5 : i32
    %159 = vector.broadcast %c5_i32_170 : i32 to vector<8x1xi32>
    %160 = arith.cmpi slt, %158, %159 : vector<8x1xi32>
    %cst_171 = arith.constant 0.000000e+00 : f32
    %161 = vector.broadcast %cst_171 : f32 to vector<8x1xf32>
    %162 = arith.select %160, %157, %161 : vector<8x1xi1>, vector<8x1xf32>
    %cst_172 = arith.constant dense<0.000000e+00> : vector<1xf32>
    %163 = vector.multi_reduction <add>, %162, %cst_172 [0] : vector<8x1xf32> to vector<1xf32>
    %164 = vector.shape_cast %163 : vector<1xf32> to vector<1x1xf32>
    %cst_173 = arith.constant 2.000000e-01 : f32
    %165 = vector.broadcast %cst_173 : f32 to vector<1x1xf32>
    %166 = arith.mulf %164, %165 : vector<1x1xf32>
    %c0_174 = arith.constant 0 : index
    %c0_175 = arith.constant 0 : index
    %167 = vector.load %arg7[%c0_174, %c0_175] : memref<1x1xf32, #tpu.memory_space<vmem>>, vector<1x1xf32>
    tpu.vector_store %arg7[%c0_174, %c0_175], %166 {strides = array<i32>} : memref<1x1xf32, #tpu.memory_space<vmem>>, vector<1x1xf32>,
    return
  }
  func.func @transform_2(%arg0: i32, %arg1: memref<8xi32, #tpu.memory_space<smem>>, %arg2: memref<8xi32, #tpu.memory_space<smem>>) -> (i32, i32) {
    %c0_i32 = arith.constant 0 : i32
    %c0_i32_0 = arith.constant 0 : i32
    %c0_i32_1 = arith.constant 0 : i32
    return %c0_i32, %c0_i32_0 : i32, i32
  }
  func.func @transform_3(%arg0: i32, %arg1: memref<8xi32, #tpu.memory_space<smem>>, %arg2: memref<8xi32, #tpu.memory_space<smem>>) -> (i32, i32) {
    %c0_i32 = arith.constant 0 : i32
    %c0_i32_0 = arith.constant 0 : i32
    %c0_i32_1 = arith.constant 0 : i32
    return %c0_i32, %c0_i32_0 : i32, i32
  }
  func.func @transform_4(%arg0: i32, %arg1: memref<8xi32, #tpu.memory_space<smem>>, %arg2: memref<8xi32, #tpu.memory_space<smem>>) -> (i32, i32) {
    %c0_i32 = arith.constant 0 : i32
    %c0_i32_0 = arith.constant 0 : i32
    %c0_i32_1 = arith.constant 0 : i32
    return %c0_i32, %c0_i32_0 : i32, i32
  }
}

</mosaic_0001>

<bundles_post_ra>
// kernel: tpu_custom_call.1
= control target key start
LH: loop header
LB: loop body
LE: loop exit
PB: predicated region body
PF: predicated region fallthrough
CT: control target
= control target key end

     0   :  { %s1106_s27 = smov [#allocation6]   ;;  %s1107_s28 = smov [#allocation7]   ;;  %s1357_s0 = inlined_call_operand.hbm [shape: s32[8], index: 0, kind: input, shape index: {}]   ;;  %s1358_s2 = inlined_call_operand.hbm [shape: f32[16,32], index: 2, kind: input, shape index: {}]   ;;  %s1359_s3 = inlined_call_operand.hbm [shape: f32[16,32], index: 3, kind: input, shape index: {}]   ;;  %s1360_s4 = inlined_call_operand.hbm [shape: f32[32,32], index: 4, kind: input, shape index: {}]   ;;  %s1361_s5 = inlined_call_operand.vmem [shape: f32[1,32], index: 5, kind: input, shape index: {}]   ;;  %s1362_s6 = inlined_call_operand.hbm [shape: f32[1,1], index: 6, kind: output, shape index: {}]   ;;  %s1363_s1 = inlined_call_operand.hbm [shape: s32[8], index: 1, kind: input, shape index: {}]  }
   0x1   :  { %s12_s23 = sshll.u32 %s1357_s0, 4  ;;  %s17_s26 = sshll.u32 %s1363_s1, 4  ;;  %s13_s23 = int_to_ptr.hbm [resolvable:$true] %s12_s23  ;;  %s18_s26 = int_to_ptr.hbm [resolvable:$true] %s17_s26 }
   0x2   :  { %15 = dma.hbm_to_smem %s13_s23, 16, %s1106_s27, [#allocation5] }
   0x3   :  { %20 = dma.hbm_to_smem %s18_s26, 16, %s1107_s28, [#allocation5] }
   0x4   :  { %1068 = dma.done.wait [#allocation5], 32 }
   0x5   :  { %1069 = vsyncadd [#allocation5], 4294967264 }
   0x6   :  { %23 = sfence }
   0x7   :  { %24 = vsyncpa [#allocation9], 0 }
   0x8   :  { %25 = vsyncpa [#allocation10], 0  ;;  %s30_s7 = sshll.u32 %s1360_s4, 4  ;;  %s1108_s0 = smov [#allocation8]   ;;  %s31_s7 = int_to_ptr.hbm [resolvable:$true] %s30_s7 }
   0x9   :  { %s32_s8 = sshll.u32 %s1108_s0, 4  ;;  %s1109_s1 = smov 128   ;;  %s33_s8 = int_to_ptr.vmem [resolvable:$true] %s32_s8 }
   0xa   :  { %s1110_s9 = smov 8  }
   0xb   :  { %38 = dma.hbm_to_vmem [thread:$0]  %s31_s7, 512, %s33_s8, [#allocation9], %s1109_s1, %s1109_s1, %s1110_s9  }
   0xc   :  { %1070 = dma.done.wait [#allocation9], 512  }
   0xd   :  { %1071 = vsyncadd [#allocation9], 4294966784  ;;  %s45_s10 = sld [smem:[#allocation6]]  ;;  %s1111_s11 = smov [#allocation2]  }
   0xe   :  { %s1172_s12 = sshll.u32 %s1111_s11, 4  ;;  %s46_s13 = sld [smem:[#allocation7]]  ;;  %s58_s12 = int_to_ptr.vmem [resolvable:$true] %s1172_s12 }
   0xf   :  { %s1112_s14 = smov [#allocation3]   ;;  %s1177_s4 = sld [smem:[#allocation6 + $0x1]] }
  0x10   :  { %s1175_s15 = sshll.u32 %s1112_s14, 4  ;;  %s1113_s16 = smov [#allocation2 + $0x1]   ;;  %s73_s15 = int_to_ptr.vmem [resolvable:$true] %s1175_s15 }
  0x11   :  { %s1180_s17 = sshll.u32 %s1113_s16, 4  ;;  %s1182_s18 = sld [smem:[#allocation7 + $0x1]]  ;;  %s91_s17 = int_to_ptr.vmem [resolvable:$true] %s1180_s17 }
  0x12   :  { %s1114_s22 = smov [#allocation3 + $0x1]   ;;  %s1196_s8 = scalar_lea.hbm %s1358_s2, 16 }
  0x13   :  { %s47_s21 = scalar_lea.hbm %s1358_s2, %s45_s10  ;;  %s1188_s23 = sshll.u32 %s1114_s22, 4  ;;  %s107_s23 = int_to_ptr.vmem [resolvable:$true] %s1188_s23 }
  0x14   :  { %s55_s24 = sshll.u32 %s47_s21, 4  ;;  %s61_s27 = scalar_lea.hbm %s1359_s3, %s46_s13  ;;  %s56_s24 = int_to_ptr.hbm [resolvable:$true] %s55_s24 }
  0x15   :  { %s70_s28 = sshll.u32 %s61_s27, 4  ;;  %s660_s29 = sshra.s32 %s56_s24, 4  ;;  %s661_s29 = int_to_ptr.hbm [resolvable:$true] %s660_s29  ;;  %s71_s28 = int_to_ptr.hbm [resolvable:$true] %s70_s28 }
  0x16   :  { %s662_s30 = scalar_lea.hbm %s661_s29, 1  ;;  %p665_p1 = scmp.lt.s32.totalorder %s661_s29, %s1358_s2 }
  0x17   :  { %p663_p0 = scmp.ne.s32.totalorder %s661_s29, %s662_s30  ;;  %p666_p2 = scmp.lt.s32.totalorder %s1196_s8, %s662_s30 }
  0x19   :  { %p667_p3 = por %p666_p2, %p665_p1 }
  0x1b   :  { %p668_p4 = pnand %p667_p3, %p663_p0 }
  0x1d   :  { %671 = shalt.err (!%p668_p4)  }
  0x1e   :  { %60 = dma.hbm_to_vmem [thread:$0]  %s56_s24, 16, %s58_s12, [#allocation4] }
  0x1f   :  { %s78_s13 = scalar_lea.hbm %s1358_s2, %s1177_s4  ;;  %s684_s14 = sshra.s32 %s71_s28, 4  ;;  %s685_s14 = int_to_ptr.hbm [resolvable:$true] %s684_s14 }
  0x20   :  { %s686_s16 = scalar_lea.hbm %s685_s14, 1  ;;  %s1209_s21 = scalar_lea.hbm %s1359_s3, 16 }
  0x21   :  { %p687_p5 = scmp.ne.s32.totalorder %s685_s14, %s686_s16  ;;  %p689_p6 = scmp.lt.s32.totalorder %s685_s14, %s1359_s3 }
  0x22   :  { %p690_p7 = scmp.lt.s32.totalorder %s1209_s21, %s686_s16 }
  0x24   :  { %p691_p8 = por %p690_p7, %p689_p6 }
  0x26   :  { %p692_p9 = pnand %p691_p8, %p687_p5 }
  0x28   :  { %695 = shalt.err (!%p692_p9)  }
  0x29   :  { %75 = dma.hbm_to_vmem [thread:$0]  %s71_s28, 16, %s73_s15, [#allocation4 + $0x8] }
  0x2a   :  { %s88_s12 = sshll.u32 %s78_s13, 4  ;;  %s94_s26 = scalar_lea.hbm %s1359_s3, %s1182_s18  ;;  %s89_s12 = int_to_ptr.hbm [resolvable:$true] %s88_s12 }
  0x2b   :  { %s104_s27 = sshll.u32 %s94_s26, 4  ;;  %s708_s29 = sshra.s32 %s89_s12, 4  ;;  %s709_s29 = int_to_ptr.hbm [resolvable:$true] %s708_s29  ;;  %s105_s27 = int_to_ptr.hbm [resolvable:$true] %s104_s27 }
  0x2c   :  { %s710_s30 = scalar_lea.hbm %s709_s29, 1  ;;  %p713_p11 = scmp.lt.s32.totalorder %s709_s29, %s1358_s2 }
  0x2d   :  { %p711_p10 = scmp.ne.s32.totalorder %s709_s29, %s710_s30  ;;  %p714_p12 = scmp.lt.s32.totalorder %s1196_s8, %s710_s30 }
  0x2f   :  { %p715_p13 = por %p714_p12, %p713_p11 }
  0x31   :  { %p716_p0 = pnand %p715_p13, %p711_p10 }
  0x33   :  { %719 = shalt.err (!%p716_p0)  }
  0x34   :  { %93 = dma.hbm_to_vmem [thread:$0]  %s89_s12, 16, %s91_s17, [#allocation4 + $0x1] }
  0x35   :  { %s732_s15 = sshra.s32 %s105_s27, 4  ;;  %s733_s15 = int_to_ptr.hbm [resolvable:$true] %s732_s15 }
  0x36   :  { %s734_s18 = scalar_lea.hbm %s733_s15, 1  ;;  %p737_p2 = scmp.lt.s32.totalorder %s733_s15, %s1359_s3 }
  0x37   :  { %p735_p1 = scmp.ne.s32.totalorder %s733_s15, %s734_s18  ;;  %p738_p3 = scmp.lt.s32.totalorder %s1209_s21, %s734_s18 }
  0x39   :  { %p739_p4 = por %p738_p3, %p737_p2 }
  0x3b   :  { %p740_p5 = pnand %p739_p4, %p735_p1 }
  0x3d   :  { %743 = shalt.err (!%p740_p5)  }
  0x3e   :  { %109 = dma.hbm_to_vmem [thread:$0]  %s105_s27, 16, %s107_s23, [#allocation4 + $0x9] }
  0x3f   :  { %s558_s9 = sld [smem:[#allocation6 + $0x2]]  ;;  %s1115_s10 = smov [#allocation2 + $0x2]  }
  0x40   :  { %s124_s11 = sshll.u32 %s1115_s10, 4  ;;  %s559_s13 = sld [smem:[#allocation7 + $0x2]]  ;;  %s125_s11 = int_to_ptr.vmem [resolvable:$true] %s124_s11 }
  0x41   :  { %s1116_s17 = smov [#allocation3 + $0x2]   ;;  %s1234_s16 = sld [smem:[#allocation6 + $0x3]] }
  0x42   :  { %s1232_s14 = sshll.u32 %s1116_s17, 4  ;;  %s1117_s19 = smov [#allocation2 + $0x3]   ;;  %s141_s14 = int_to_ptr.vmem [resolvable:$true] %s1232_s14 }
  0x43   :  { %s1237_s20 = sshll.u32 %s1117_s19, 4  ;;  %s1239_s22 = sld [smem:[#allocation7 + $0x3]]  ;;  %s159_s20 = int_to_ptr.vmem [resolvable:$true] %s1237_s20 }
  0x45   :  { %s112_s12 = scalar_lea.hbm %s1358_s2, %s558_s9 }
  0x46   :  { %s122_s4 = sshll.u32 %s112_s12, 4  ;;  %s128_s27 = scalar_lea.hbm %s1359_s3, %s559_s13  ;;  %s123_s4 = int_to_ptr.hbm [resolvable:$true] %s122_s4 }
  0x47   :  { %s138_s29 = sshll.u32 %s128_s27, 4  ;;  %s756_s30 = sshra.s32 %s123_s4, 4  ;;  %s757_s30 = int_to_ptr.hbm [resolvable:$true] %s756_s30  ;;  %s139_s29 = int_to_ptr.hbm [resolvable:$true] %s138_s29 }
  0x48   :  { %s758_s7 = scalar_lea.hbm %s757_s30, 1  ;;  %p761_p7 = scmp.lt.s32.totalorder %s757_s30, %s1358_s2 }
  0x49   :  { %p759_p6 = scmp.ne.s32.totalorder %s757_s30, %s758_s7  ;;  %p762_p8 = scmp.lt.s32.totalorder %s1196_s8, %s758_s7 }
  0x4b   :  { %p763_p9 = por %p762_p8, %p761_p7 }
  0x4d   :  { %p764_p10 = pnand %p763_p9, %p759_p6 }
  0x4f   :  { %767 = shalt.err (!%p764_p10)  }
  0x50   :  { %127 = dma.hbm_to_vmem [thread:$0]  %s123_s4, 16, %s125_s11, [#allocation4 + $0x2] }
  0x51   :  { %s146_s1 = scalar_lea.hbm %s1358_s2, %s1234_s16  ;;  %s780_s9 = sshra.s32 %s139_s29, 4  ;;  %s781_s9 = int_to_ptr.hbm [resolvable:$true] %s780_s9 }
  0x52   :  { %s782_s10 = scalar_lea.hbm %s781_s9, 1  ;;  %p785_p12 = scmp.lt.s32.totalorder %s781_s9, %s1359_s3 }
  0x53   :  { %p783_p11 = scmp.ne.s32.totalorder %s781_s9, %s782_s10  ;;  %p786_p13 = scmp.lt.s32.totalorder %s1209_s21, %s782_s10 }
  0x55   :  { %p787_p0 = por %p786_p13, %p785_p12 }
  0x57   :  { %p788_p1 = pnand %p787_p0, %p783_p11 }
  0x59   :  { %791 = shalt.err (!%p788_p1)  }
  0x5a   :  { %143 = dma.hbm_to_vmem [thread:$0]  %s139_s29, 16, %s141_s14, [#allocation4 + $0xa] }
  0x5b   :  { %s156_s11 = sshll.u32 %s146_s1, 4  ;;  %s162_s23 = scalar_lea.hbm %s1359_s3, %s1239_s22  ;;  %s157_s11 = int_to_ptr.hbm [resolvable:$true] %s156_s11 }
  0x5c   :  { %s172_s25 = sshll.u32 %s162_s23, 4  ;;  %s804_s12 = sshra.s32 %s157_s11, 4  ;;  %s805_s12 = int_to_ptr.hbm [resolvable:$true] %s804_s12  ;;  %s173_s25 = int_to_ptr.hbm [resolvable:$true] %s172_s25 }
  0x5d   :  { %s806_s4 = scalar_lea.hbm %s805_s12, 1  ;;  %p809_p3 = scmp.lt.s32.totalorder %s805_s12, %s1358_s2 }
  0x5e   :  { %p807_p2 = scmp.ne.s32.totalorder %s805_s12, %s806_s4  ;;  %p810_p4 = scmp.lt.s32.totalorder %s1196_s8, %s806_s4 }
  0x60   :  { %p811_p5 = por %p810_p4, %p809_p3 }
  0x62   :  { %p812_p6 = pnand %p811_p5, %p807_p2 }
  0x64   :  { %815 = shalt.err (!%p812_p6)  }
  0x65   :  { %161 = dma.hbm_to_vmem [thread:$0]  %s157_s11, 16, %s159_s20, [#allocation4 + $0x3] }
  0x66   :  { %s1118_s14 = smov [#allocation3 + $0x3]   ;;  %s562_s27 = sld [smem:[#allocation6 + $0x4]] }
  0x67   :  { %s174_s22 = sshll.u32 %s1118_s14, 4  ;;  %s828_s29 = sshra.s32 %s173_s25, 4  ;;  %s175_s22 = int_to_ptr.vmem [resolvable:$true] %s174_s22  ;;  %s829_s29 = int_to_ptr.hbm [resolvable:$true] %s828_s29 }
  0x68   :  { %s830_s30 = scalar_lea.hbm %s829_s29, 1  ;;  %p833_p8 = scmp.lt.s32.totalorder %s829_s29, %s1359_s3 }
  0x69   :  { %p831_p7 = scmp.ne.s32.totalorder %s829_s29, %s830_s30  ;;  %p834_p9 = scmp.lt.s32.totalorder %s1209_s21, %s830_s30 }
  0x6b   :  { %p835_p10 = por %p834_p9, %p833_p8 }
  0x6d   :  { %p836_p11 = pnand %p835_p10, %p831_p7 }
  0x6f   :  { %839 = shalt.err (!%p836_p11)  }
  0x70   :  { %177 = dma.hbm_to_vmem [thread:$0]  %s173_s25, 16, %s175_s22, [#allocation4 + $0xb] }
  0x71   :  { %s1119_s15 = smov [#allocation2 + $0x4]   ;;  %s563_s18 = sld [smem:[#allocation7 + $0x4]] }
  0x72   :  { %s192_s20 = sshll.u32 %s1119_s15, 4  ;;  %s1120_s28 = smov [#allocation3 + $0x4]   ;;  %s193_s20 = int_to_ptr.vmem [resolvable:$true] %s192_s20 }
  0x73   :  { %s1276_s1 = sshll.u32 %s1120_s28, 4  ;;  %s564_s9 = sld [smem:[#allocation6 + $0x5]]  ;;  %s209_s1 = int_to_ptr.vmem [resolvable:$true] %s1276_s1 }
  0x74   :  { %s180_s17 = scalar_lea.hbm %s1358_s2, %s562_s27  ;;  %s1121_s19 = smov [#allocation2 + $0x5]  }
  0x75   :  { %s190_s11 = sshll.u32 %s180_s17, 4  ;;  %s1282_s16 = sshll.u32 %s1121_s19, 4  ;;  %s191_s11 = int_to_ptr.hbm [resolvable:$true] %s190_s11  ;;  %s227_s16 = int_to_ptr.vmem [resolvable:$true] %s1282_s16 }
  0x76   :  { %s852_s23 = sshra.s32 %s191_s11, 4  ;;  %s853_s23 = int_to_ptr.hbm [resolvable:$true] %s852_s23 }
  0x77   :  { %s854_s25 = scalar_lea.hbm %s853_s23, 1  ;;  %p857_p13 = scmp.lt.s32.totalorder %s853_s23, %s1358_s2 }
  0x78   :  { %p855_p12 = scmp.ne.s32.totalorder %s853_s23, %s854_s25  ;;  %p858_p0 = scmp.lt.s32.totalorder %s1196_s8, %s854_s25 }
  0x7a   :  { %p859_p1 = por %p858_p0, %p857_p13 }
  0x7c   :  { %p860_p2 = pnand %p859_p1, %p855_p12 }
  0x7e   :  { %863 = shalt.err (!%p860_p2)  }
  0x7f   :  { %195 = dma.hbm_to_vmem [thread:$0]  %s191_s11, 16, %s193_s20, [#allocation4 + $0x4] }
  0x80   :  { %s196_s14 = scalar_lea.hbm %s1359_s3, %s563_s18  ;;  %s214_s30 = scalar_lea.hbm %s1358_s2, %s564_s9 }
  0x81   :  { %s206_s22 = sshll.u32 %s196_s14, 4  ;;  %s224_s7 = sshll.u32 %s214_s30, 4  ;;  %s207_s22 = int_to_ptr.hbm [resolvable:$true] %s206_s22  ;;  %s225_s7 = int_to_ptr.hbm [resolvable:$true] %s224_s7 }
  0x82   :  { %s876_s0 = sshra.s32 %s207_s22, 4  ;;  %s877_s0 = int_to_ptr.hbm [resolvable:$true] %s876_s0 }
  0x83   :  { %s878_s15 = scalar_lea.hbm %s877_s0, 1  ;;  %p881_p4 = scmp.lt.s32.totalorder %s877_s0, %s1359_s3 }
  0x84   :  { %p879_p3 = scmp.ne.s32.totalorder %s877_s0, %s878_s15  ;;  %p882_p5 = scmp.lt.s32.totalorder %s1209_s21, %s878_s15 }
  0x86   :  { %p883_p6 = por %p882_p5, %p881_p4 }
  0x88   :  { %p884_p7 = pnand %p883_p6, %p879_p3 }
  0x8a   :  { %887 = shalt.err (!%p884_p7)  }
  0x8b   :  { %211 = dma.hbm_to_vmem [thread:$0]  %s207_s22, 16, %s209_s1, [#allocation4 + $0xc] }
  0x8c   :  { %s565_s18 = sld [smem:[#allocation7 + $0x5]]  ;;  %s900_s9 = sshra.s32 %s225_s7, 4  ;;  %s901_s9 = int_to_ptr.hbm [resolvable:$true] %s900_s9 }
  0x8d   :  { %s902_s10 = scalar_lea.hbm %s901_s9, 1  ;;  %p905_p9 = scmp.lt.s32.totalorder %s901_s9, %s1358_s2 }
  0x8e   :  { %p903_p8 = scmp.ne.s32.totalorder %s901_s9, %s902_s10  ;;  %p906_p10 = scmp.lt.s32.totalorder %s1196_s8, %s902_s10 }
  0x90   :  { %p907_p11 = por %p906_p10, %p905_p9 }
  0x92   :  { %p908_p12 = pnand %p907_p11, %p903_p8 }
  0x94   :  { %911 = shalt.err (!%p908_p12)  }
  0x95   :  { %229 = dma.hbm_to_vmem [thread:$0]  %s225_s7, 16, %s227_s16, [#allocation4 + $0x5] }
  0x96   :  { %s566_s11 = sld [smem:[#allocation6 + $0x6]]  ;;  %s1122_s19 = smov [#allocation3 + $0x5]  }
  0x97   :  { %s242_s23 = sshll.u32 %s1122_s19, 4  ;;  %s1123_s1 = smov [#allocation2 + $0x6]   ;;  %s243_s23 = int_to_ptr.vmem [resolvable:$true] %s242_s23 }
  0x98   :  { %s1305_s25 = sshll.u32 %s1123_s1, 4  ;;  %s1308_s12 = sld [smem:[#allocation7 + $0x6]]  ;;  %s261_s25 = int_to_ptr.vmem [resolvable:$true] %s1305_s25 }
  0x99   :  { %s230_s26 = scalar_lea.hbm %s1359_s3, %s565_s18  ;;  %s1124_s22 = smov [#allocation3 + $0x6]  }
  0x9a   :  { %s240_s14 = sshll.u32 %s230_s26, 4  ;;  %s1313_s27 = sshll.u32 %s1124_s22, 4  ;;  %s241_s14 = int_to_ptr.hbm [resolvable:$true] %s240_s14  ;;  %s277_s27 = int_to_ptr.vmem [resolvable:$true] %s1313_s27 }
  0x9b   :  { %s924_s7 = sshra.s32 %s241_s14, 4  ;;  %s925_s7 = int_to_ptr.hbm [resolvable:$true] %s924_s7 }
  0x9c   :  { %s248_s30 = scalar_lea.hbm %s1358_s2, %s566_s11  ;;  %s926_s0 = scalar_lea.hbm %s925_s7, 1 }
  0x9d   :  { %p927_p13 = scmp.ne.s32.totalorder %s925_s7, %s926_s0  ;;  %p929_p0 = scmp.lt.s32.totalorder %s925_s7, %s1359_s3 }
  0x9e   :  { %p930_p1 = scmp.lt.s32.totalorder %s1209_s21, %s926_s0 }
  0xa0   :  { %p931_p2 = por %p930_p1, %p929_p0 }
  0xa2   :  { %p932_p3 = pnand %p931_p2, %p927_p13 }
  0xa4   :  { %935 = shalt.err (!%p932_p3)  }
  0xa5   :  { %245 = dma.hbm_to_vmem [thread:$0]  %s241_s14, 16, %s243_s23, [#allocation4 + $0xd] }
  0xa6   :  { %s258_s20 = sshll.u32 %s248_s30, 4  ;;  %s264_s10 = scalar_lea.hbm %s1359_s3, %s1308_s12  ;;  %s259_s20 = int_to_ptr.hbm [resolvable:$true] %s258_s20 }
  0xa7   :  { %s948_s13 = sshra.s32 %s259_s20, 4  ;;  %s949_s13 = int_to_ptr.hbm [resolvable:$true] %s948_s13 }
  0xa8   :  { %s950_s17 = scalar_lea.hbm %s949_s13, 1  ;;  %p953_p5 = scmp.lt.s32.totalorder %s949_s13, %s1358_s2 }
  0xa9   :  { %p951_p4 = scmp.ne.s32.totalorder %s949_s13, %s950_s17  ;;  %p954_p6 = scmp.lt.s32.totalorder %s1196_s8, %s950_s17 }
  0xab   :  { %p955_p7 = por %p954_p6, %p953_p5 }
  0xad   :  { %p956_p8 = pnand %p955_p7, %p951_p4 }
  0xaf   :  { %959 = shalt.err (!%p956_p8)  }
  0xb0   :  { %263 = dma.hbm_to_vmem [thread:$0]  %s259_s20, 16, %s261_s25, [#allocation4 + $0x6] }
  0xb1   :  { %s274_s23 = sshll.u32 %s264_s10, 4  ;;  %s568_s1 = sld [smem:[#allocation6 + $0x7]]  ;;  %s275_s23 = int_to_ptr.hbm [resolvable:$true] %s274_s23 }
  0xb2   :  { %s972_s12 = sshra.s32 %s275_s23, 4  ;;  %s973_s12 = int_to_ptr.hbm [resolvable:$true] %s972_s12 }
  0xb3   :  { %s974_s4 = scalar_lea.hbm %s973_s12, 1  ;;  %p977_p10 = scmp.lt.s32.totalorder %s973_s12, %s1359_s3 }
  0xb4   :  { %p975_p9 = scmp.ne.s32.totalorder %s973_s12, %s974_s4  ;;  %p978_p11 = scmp.lt.s32.totalorder %s1209_s21, %s974_s4 }
  0xb6   :  { %p979_p12 = por %p978_p11, %p977_p10 }
  0xb8   :  { %p980_p13 = pnand %p979_p12, %p975_p9 }
  0xba   :  { %983 = shalt.err (!%p980_p13)  }
  0xbb   :  { %279 = dma.hbm_to_vmem [thread:$0]  %s275_s23, 16, %s277_s27, [#allocation4 + $0xe] }
  0xbc   :  { %s1125_s14 = smov [#allocation2 + $0x7]   ;;  %s569_s25 = sld [smem:[#allocation7 + $0x7]] }
  0xbd   :  { %s294_s22 = sshll.u32 %s1125_s14, 4  ;;  %s282_s30 = scalar_lea.hbm %s1358_s2, %s568_s1  ;;  %s295_s22 = int_to_ptr.vmem [resolvable:$true] %s294_s22 }
  0xbe   :  { %s292_s7 = sshll.u32 %s282_s30, 4  ;;  %s1126_s0 = smov [#allocation3 + $0x7]   ;;  %s293_s7 = int_to_ptr.hbm [resolvable:$true] %s292_s7 }
  0xbf   :  { %s310_s15 = sshll.u32 %s1126_s0, 4  ;;  %s996_s28 = sshra.s32 %s293_s7, 4  ;;  %s997_s28 = int_to_ptr.hbm [resolvable:$true] %s996_s28  ;;  %s311_s15 = int_to_ptr.vmem [resolvable:$true] %s310_s15 }
  0xc0   :  { %s998_s20 = scalar_lea.hbm %s997_s28, 1  ;;  %p1001_p1 = scmp.lt.s32.totalorder %s997_s28, %s1358_s2 }
  0xc1   :  { %p999_p0 = scmp.ne.s32.totalorder %s997_s28, %s998_s20  ;;  %p1002_p2 = scmp.lt.s32.totalorder %s1196_s8, %s998_s20 }
  0xc3   :  { %p1003_p3 = por %p1002_p2, %p1001_p1 }
  0xc5   :  { %p1004_p4 = pnand %p1003_p3, %p999_p0 }
  0xc7   :  { %1007 = shalt.err (!%p1004_p4)  }
  0xc8   :  { %297 = dma.hbm_to_vmem [thread:$0]  %s293_s7, 16, %s295_s22, [#allocation4 + $0x7] }
  0xc9   :  { %s298_s13 = scalar_lea.hbm %s1359_s3, %s569_s25 }
  0xca   :  { %s308_s17 = sshll.u32 %s298_s13, 4  ;;  %s309_s17 = int_to_ptr.hbm [resolvable:$true] %s308_s17 }
  0xcb   :  { %s1020_s11 = sshra.s32 %s309_s17, 4  ;;  %s1021_s11 = int_to_ptr.hbm [resolvable:$true] %s1020_s11 }
  0xcc   :  { %s1022_s19 = scalar_lea.hbm %s1021_s11, 1  ;;  %p1025_p6 = scmp.lt.s32.totalorder %s1021_s11, %s1359_s3 }
  0xcd   :  { %p1023_p5 = scmp.ne.s32.totalorder %s1021_s11, %s1022_s19  ;;  %p1026_p7 = scmp.lt.s32.totalorder %s1209_s21, %s1022_s19 }
  0xcf   :  { %p1027_p8 = por %p1026_p7, %p1025_p6 }
  0xd1   :  { %p1028_p9 = pnand %p1027_p8, %p1023_p5 }
  0xd3   :  { %1031 = shalt.err (!%p1028_p9)  }
  0xd4   :  { %313 = dma.hbm_to_vmem [thread:$0]  %s309_s17, 16, %s311_s15, [#allocation4 + $0xf] }
  0xd5   :  { %1072 = dma.done.wait [#allocation4], 16 }
  0xd6   :  { %1073 = vsyncadd [#allocation4], 4294967280 }
  0xd7   :  { %1074 = dma.done.wait [#allocation4 + $0x8], 16 }
  0xd8   :  { %1075 = vsyncadd [#allocation4 + $0x8], 4294967280 }
  0xd9   :  { %1076 = dma.done.wait [#allocation4 + $0x1], 16 }
  0xda   :  { %1077 = vsyncadd [#allocation4 + $0x1], 4294967280 }
  0xdb   :  { %1078 = dma.done.wait [#allocation4 + $0x9], 16 }
  0xdc   :  { %1079 = vsyncadd [#allocation4 + $0x9], 4294967280 }
  0xdd   :  { %1080 = dma.done.wait [#allocation4 + $0x2], 16 }
  0xde   :  { %1081 = vsyncadd [#allocation4 + $0x2], 4294967280 }
  0xdf   :  { %1082 = dma.done.wait [#allocation4 + $0xa], 16 }
  0xe0   :  { %1083 = vsyncadd [#allocation4 + $0xa], 4294967280 }
  0xe1   :  { %1084 = dma.done.wait [#allocation4 + $0x3], 16 }
  0xe2   :  { %1085 = vsyncadd [#allocation4 + $0x3], 4294967280 }
  0xe3   :  { %1086 = dma.done.wait [#allocation4 + $0xb], 16 }
  0xe4   :  { %1087 = vsyncadd [#allocation4 + $0xb], 4294967280 }
  0xe5   :  { %1088 = dma.done.wait [#allocation4 + $0x4], 16 }
  0xe6   :  { %1089 = vsyncadd [#allocation4 + $0x4], 4294967280 }
  0xe7   :  { %1090 = dma.done.wait [#allocation4 + $0xc], 16 }
  0xe8   :  { %1091 = vsyncadd [#allocation4 + $0xc], 4294967280 }
  0xe9   :  { %1092 = dma.done.wait [#allocation4 + $0x5], 16 }
  0xea   :  { %1093 = vsyncadd [#allocation4 + $0x5], 4294967280 }
  0xeb   :  { %1094 = dma.done.wait [#allocation4 + $0xd], 16 }
  0xec   :  { %1095 = vsyncadd [#allocation4 + $0xd], 4294967280 }
  0xed   :  { %1096 = dma.done.wait [#allocation4 + $0x6], 16 }
  0xee   :  { %1097 = vsyncadd [#allocation4 + $0x6], 4294967280 }
  0xef   :  { %1098 = dma.done.wait [#allocation4 + $0xe], 16 }
  0xf0   :  { %1099 = vsyncadd [#allocation4 + $0xe], 4294967280 }
  0xf1   :  { %1100 = dma.done.wait [#allocation4 + $0x7], 16 }
  0xf2   :  { %1101 = vsyncadd [#allocation4 + $0x7], 4294967280 }
  0xf3   :  { %1102 = dma.done.wait [#allocation4 + $0xf], 16 }
  0xf4   :  { %1103 = vsyncadd [#allocation4 + $0xf], 4294967280  ;;  %v351_v0 = vld [vmem:[#allocation8 + $0x18] sm:$0xff]  ;;  %v350_v1 = vld [vmem:[#allocation8 + $0x10] sm:$0xff]  ;;  %vm356_vm0 = vcmask 261120   ;;  %v399_v17 = vlaneseq  ;;  %s419_s4 = sshll.u32 %s1362_s6, 4  ;;  %s420_s4 = int_to_ptr.hbm [resolvable:$true] %s419_s4 }
  0xf5   :  { %372 = vmatpush.msra.mxu0 %v351_v0  ;;  %v349_v2 = vld [vmem:[#allocation8 + $0x8] sm:$0xff]  ;;  %v348_v3 = vld [vmem:[#allocation8] sm:$0xff]  ;;  %v347_v4 = vld [vmem:[#allocation3] sm:$0xff]  ;;  %vm410_vm4 = vcmask 0  }
  0xf6   :  { %v609_v5 = vld [vmem:[%s1361_s5] ss:$0 sm:$0xff]  ;;  %v400_v20 = vshrl.u32 %v399_v17, 7  ;;  %s1127_s5 = smov [#allocation11]  }
  0xf7   :  { %373 = vmatpush.msra.mxu0 %v350_v1  ;;  %v380_v7 = vld [vmem:[#allocation2] sm:$0xff]  ;;  %s417_s8 = sshll.u32 %s1127_s5, 4  ;;  %s418_s8 = int_to_ptr.vmem [resolvable:$true] %s417_s8 }
  0xf8   :  { %vm401_vm2 = vcmp.lt.s32.totalorder %v400_v20, 5 }
  0xf9   :  { %374 = vmatpush.msra.mxu0 %v349_v2 }
  0xfb   :  { %375 = vmatpush.msra.mxu0 %v348_v3 }
  0xfc   :  { %570 = vmatmul.msk.f32.vlgmr.msra.gmra.mxu0 %vm356_vm0, %v347_v4 }
 0x179   :  { %v377_v6 = vpop.f32.mrf.mxu0 }
 0x17a   :  { %v378_v8 = vadd.f32 %v609_v5, %v377_v6 }
 0x17c   :  { %v381_v9 = vsub.f32 %v380_v7, %v378_v8 }
 0x17e   :  { %v382_v10 = vadd.f32 1e-06, %v381_v9 }
 0x180   :  { %v383_v11 = vmul.f32 %v382_v10, %v382_v10 }
 0x182   :  { %v384_v12 = vsel %vm356_vm0, %v383_v11, 0.0 }
 0x183   :  { %385 = vadd.xlane.f32.xlu0 %v384_v12 }
 0x1f6   :  { %v386_v13 = vpop.xlane.xlu0 %385 }
 0x1f7   :  { %610 = vrsqrt.f32 %v386_v13  ;;  %vm394_vm1 = vcmp.eq.f32.partialorder %v386_v13, inf  ;;  %v397_v23 = vand.u32 2147483648, %v386_v13  ;;  %vm396_vm3 = vcmp.eq.f32.partialorder %v386_v13, 0.0 }
 0x1fd   :  { %v611_v14 = vpop.eup %610 }
 0x1fe   :  { %v388_v15 = vmul.f32 %v611_v14, %v386_v13 }
 0x200   :  { %v389_v16 = vmul.f32 %v611_v14, %v388_v15 }
 0x202   :  { %v390_v18 = vmul.f32 0.5, %v389_v16 }
 0x204   :  { %v391_v19 = vsub.f32 1.5, %v390_v18 }
 0x206   :  { %v392_v21 = vmul.f32 %v611_v14, %v391_v19 }
 0x208   :  { %v393_v22 = vmul.f32 %v392_v21, %v386_v13 }
 0x20a   :  { %v395_v24 = vsel %vm394_vm1, %v386_v13, %v393_v22 }
 0x20b   :  { %v398_v25 = vsel %vm396_vm3, %v397_v23, %v395_v24 }
 0x20c   :  { %v402_v26 = vsel %vm401_vm2, %v398_v25, 0.0 }
 0x20d   :  { %v403_v27 = vrot.slane %v402_v26, 4 }
 0x20f   :  { %v404_v28 = vadd.f32 %v403_v27, %v402_v26 }
 0x211   :  { %v405_v29 = vrot.slane %v404_v28, 2 }
 0x213   :  { %v406_v30 = vadd.f32 %v405_v29, %v404_v28 }
 0x215   :  { %v407_v31 = vrot.slane %v406_v30, 1 }
 0x217   :  { %v408_v32 = vadd.f32 %v407_v31, %v406_v30 }
 0x219   :  { %v409_v33 = vmul.f32 0.2, %v408_v32 }
 0x21b   :  { %411 = vst.msk [vmem:[#allocation11] sm:$0x1] %vm410_vm4, %v409_v33 }
 0x21c   :  { %422 = dma.vmem_to_hbm [thread:$0]  %s418_s8, 16, %s420_s4, [#allocation10]  }
 0x21d   :  { %1104 = dma.done.wait [#allocation10], 16  }
 0x21e   :  { %1105 = vsyncadd [#allocation10], 4294967280 }
 0x21f   :  { %427 = vsyncpa [#allocation9], 1 }
 0x220   :  { %428 = vsyncpa [#allocation10], 1 }
 0x221   :  { %429 = vsyncmov [#allocation4] }
 0x224   :  { %s430_s24 = vpop.sfrf %429 }
 0x225   :  { %p571_p10 = scmp.ne.s32.totalorder %s430_s24, 0 }
 0x227   :  { %434 = shalt.err (%p571_p10)  }
 0x228   :  { %436 = vsyncmov [#allocation4 + $0x1] }
 0x22b   :  { %s437_s26 = vpop.sfrf %436 }
 0x22c   :  { %p572_p11 = scmp.ne.s32.totalorder %s437_s26, 0 }
 0x22e   :  { %441 = shalt.err (%p572_p11)  }
 0x22f   :  { %443 = vsyncmov [#allocation4 + $0x2] }
 0x232   :  { %s444_s6 = vpop.sfrf %443 }
 0x233   :  { %p573_p12 = scmp.ne.s32.totalorder %s444_s6, 0 }
 0x235   :  { %448 = shalt.err (%p573_p12)  }
 0x236   :  { %450 = vsyncmov [#allocation4 + $0x3] }
 0x239   :  { %s451_s14 = vpop.sfrf %450 }
 0x23a   :  { %p574_p13 = scmp.ne.s32.totalorder %s451_s14, 0 }
 0x23c   :  { %455 = shalt.err (%p574_p13)  }
 0x23d   :  { %457 = vsyncmov [#allocation4 + $0x4] }
 0x240   :  { %s458_s22 = vpop.sfrf %457 }
 0x241   :  { %p575_p0 = scmp.ne.s32.totalorder %s458_s22, 0 }
 0x243   :  { %462 = shalt.err (%p575_p0)  }
 0x244   :  { %464 = vsyncmov [#allocation4 + $0x5] }
 0x247   :  { %s465_s25 = vpop.sfrf %464 }
 0x248   :  { %p576_p1 = scmp.ne.s32.totalorder %s465_s25, 0 }
 0x24a   :  { %469 = shalt.err (%p576_p1)  }
 0x24b   :  { %471 = vsyncmov [#allocation4 + $0x6] }
 0x24e   :  { %s472_s16 = vpop.sfrf %471 }
 0x24f   :  { %p577_p2 = scmp.ne.s32.totalorder %s472_s16, 0 }
 0x251   :  { %476 = shalt.err (%p577_p2)  }
 0x252   :  { %478 = vsyncmov [#allocation4 + $0x7] }
 0x255   :  { %s479_s29 = vpop.sfrf %478 }
 0x256   :  { %p578_p3 = scmp.ne.s32.totalorder %s479_s29, 0 }
 0x258   :  { %483 = shalt.err (%p578_p3)  }
 0x259   :  { %485 = vsyncmov [#allocation4 + $0x8] }
 0x25c   :  { %s486_s30 = vpop.sfrf %485 }
 0x25d   :  { %p579_p4 = scmp.ne.s32.totalorder %s486_s30, 0 }
 0x25f   :  { %490 = shalt.err (%p579_p4)  }
 0x260   :  { %492 = vsyncmov [#allocation4 + $0x9] }
 0x263   :  { %s493_s7 = vpop.sfrf %492 }
 0x264   :  { %p580_p5 = scmp.ne.s32.totalorder %s493_s7, 0 }
 0x266   :  { %497 = shalt.err (%p580_p5)  }
 0x267   :  { %499 = vsyncmov [#allocation4 + $0xa] }
 0x26a   :  { %s500_s0 = vpop.sfrf %499 }
 0x26b   :  { %p581_p6 = scmp.ne.s32.totalorder %s500_s0, 0 }
 0x26d   :  { %504 = shalt.err (%p581_p6)  }
 0x26e   :  { %506 = vsyncmov [#allocation4 + $0xb] }
 0x271   :  { %s507_s15 = vpop.sfrf %506 }
 0x272   :  { %p582_p7 = scmp.ne.s32.totalorder %s507_s15, 0 }
 0x274   :  { %511 = shalt.err (%p582_p7)  }
 0x275   :  { %513 = vsyncmov [#allocation4 + $0xc] }
 0x278   :  { %s514_s28 = vpop.sfrf %513 }
 0x279   :  { %p583_p8 = scmp.ne.s32.totalorder %s514_s28, 0 }
 0x27b   :  { %518 = shalt.err (%p583_p8)  }
 0x27c   :  { %520 = vsyncmov [#allocation4 + $0xd] }
 0x27f   :  { %s521_s20 = vpop.sfrf %520 }
 0x280   :  { %p584_p9 = scmp.ne.s32.totalorder %s521_s20, 0 }
 0x282   :  { %525 = shalt.err (%p584_p9)  }
 0x283   :  { %527 = vsyncmov [#allocation4 + $0xe] }
 0x286   :  { %s528_s18 = vpop.sfrf %527 }
 0x287   :  { %p585_p10 = scmp.ne.s32.totalorder %s528_s18, 0 }
 0x289   :  { %532 = shalt.err (%p585_p10)  }
 0x28a   :  { %534 = vsyncmov [#allocation4 + $0xf] }
 0x28d   :  { %s535_s9 = vpop.sfrf %534 }
 0x28e   :  { %p586_p11 = scmp.ne.s32.totalorder %s535_s9, 0 }
 0x290   :  { %539 = shalt.err (%p586_p11)  }

</bundles_post_ra>
